<compile_context>
chip_gen: v7x
topology: tpu7x:2x2x1
jax: 0.10.0
libtpu: 0.0.40
codegen_flags: <defaults>
</compile_context>

<pallas_src>
import functools

import jax
import jax.numpy as jnp
from jax import lax
from jax.experimental import pallas as pl
from jax.experimental.pallas import tpu as pltpu
import numpy as np


def _round_up(x, m):
    return (x + m - 1) // m * m


def dan_kernel(hit_ref, nhit_ref, ids_ref, len_ref, emb_ref,
               w1_ref, b1_ref, w2_ref, b2_ref, out_ref, acc_ref,
               *, strip, count_dtype):
    i = pl.program_id(0)
    v = pl.program_id(1)
    nv = pl.num_programs(1)
    tb, S = ids_ref.shape
    tv = emb_ref.shape[0]

    @pl.when(v == 0)
    def _init():
        acc_ref[...] = jnp.zeros_like(acc_ref)

    # Only do work for vocab tiles that actually contain tokens of this batch
    # tile. Padding steps repeat the previous block index (no DMA) and skip
    # all compute here.
    @pl.when(v < nhit_ref[i])
    def _accumulate():
        tile = hit_ref[i, v]                  # which vocab tile this step is
        base = tile * tv                      # first vocab id in the tile
        ids = ids_ref[...]                    # (tb, S) int32

        # Strip-wise token counting keeps only a (tb, strip) int32 chunk live
        # across the unrolled S loop; each strip feeds one MXU matmul.
        for st in range(tv // strip):         # static, small
            col0 = st * strip
            lane_ids = lax.broadcasted_iota(jnp.int32, (tb, strip), 1) + (base + col0)
            counts = jnp.zeros((tb, strip), jnp.int32)
            for s in range(S):                 # S is small & static here
                # TODO(synk): for large S use lax.fori_loop(..., unroll=8).
                counts = counts + (ids[:, s:s + 1] == lane_ids)
            # counts <= S, exact in bf16 for S <= 256 (count_dtype handles it).
            acc_ref[...] += jnp.dot(counts.astype(count_dtype),
                                    emb_ref[col0:col0 + strip, :],
                                    preferred_element_type=jnp.float32)

    # Epilogue once per batch tile: mean-by-length, MLP, softmax.
    @pl.when(v == nv - 1)
    def _epilogue():
        inv_len = pl.reciprocal(len_ref[...], approx=False)       # (tb, 1)
        encoded = acc_ref[...] * inv_len                          # (tb, Dp) f32

        h = jnp.dot(encoded.astype(jnp.bfloat16), w1_ref[...],
                    preferred_element_type=jnp.float32) + b1_ref[...]
        h = jnp.maximum(h, 0.0)                                   # ReLU (f32)

        logits = jnp.dot(h.astype(jnp.bfloat16), w2_ref[...],
                         preferred_element_type=jnp.float32) + b2_ref[...]

        # Row softmax (padded class columns carry bias -1e9 -> exp ~ 0).
        m = jnp.max(logits, axis=-1, keepdims=True)
        e = jnp.exp(logits - m)
        out_ref[...] = e * pl.reciprocal(jnp.sum(e, axis=-1, keepdims=True),
                                         approx=False)


def prepare_params(emb, w1, b1, w2, b2, *, tv=4096):
    """One-time padding + bf16 cast of the model parameters (hoisted out of
    the per-call path, per perf review)."""
    V, D = emb.shape
    H = w1.shape[1]
    C = w2.shape[1]
    Dp = _round_up(D, 128)
    Hp = _round_up(H, 128)
    Cp = _round_up(C, 128)

    if V <= 512:
        tv = _round_up(V, 8)
    else:
        # Keep tv a multiple of 512 (strip width) and cap it so a
        # double-buffered bf16 emb tile stays <= ~24 MiB total (v7x-safe).
        max_tv = max(512, ((12 << 20) // (Dp * 2)) // 512 * 512)
        tv = min(_round_up(min(tv, _round_up(V, 512)), 512), max_tv)
    Vp = _round_up(V, tv)

    emb_p = jnp.zeros((Vp, Dp), jnp.bfloat16).at[:V, :D].set(emb.astype(jnp.bfloat16))
    w1_p = jnp.zeros((Dp, Hp), jnp.bfloat16).at[:D, :H].set(w1.astype(jnp.bfloat16))
    b1_p = jnp.zeros((1, Hp), jnp.float32).at[:, :H].set(b1.astype(jnp.float32))
    w2_p = jnp.zeros((Hp, Cp), jnp.bfloat16).at[:H, :C].set(w2.astype(jnp.bfloat16))
    b2_p = jnp.full((1, Cp), -1e9, jnp.float32).at[:, :C].set(b2.astype(jnp.float32))

    return dict(emb=emb_p, w1=w1_p, b1=b1_p, w2=w2_p, b2=b2_p,
                V=V, D=D, H=H, C=C, Vp=Vp, Dp=Dp, Hp=Hp, Cp=Cp, tv=tv)


def dan_forward(ids, text_len, params, *, tb=128):
    """ids: (B,S) int32; text_len: (B,1) f32; params from prepare_params()."""
    B, S = ids.shape
    V, Vp, Dp, Hp, Cp, C, tv = (params[k] for k in
                                ("V", "Vp", "Dp", "Hp", "Cp", "C", "tv"))
    assert tb % 8 == 0
    # NOTE(v7x): for large B prefer tb such that Bp//tb >= 2 so both
    # TensorCores get work from the "parallel" batch axis.
    Bp = _round_up(max(B, tb), tb)
    num_bt = Bp // tb
    num_vt = Vp // tv

    # Per-call input padding (cheap: O(B*S)).
    ids_p = jnp.zeros((Bp, S), jnp.int32).at[:B].set(ids.astype(jnp.int32))
    len_p = jnp.ones((Bp, 1), jnp.float32).at[:B].set(text_len.astype(jnp.float32))

    # --- Hit-tile compression (scalar prefetch) ----------------------------
    # Per batch tile, which vocab tiles contain at least one of its tokens.
    tok_tile = ids_p // tv                                        # (Bp, S)
    bt_idx = jnp.arange(Bp, dtype=jnp.int32) // tb                # (Bp,)
    hits = jnp.zeros((num_bt, num_vt), jnp.int32)
    hits = hits.at[bt_idx[:, None], tok_tile].set(1)              # bitmap
    n_hit = hits.sum(axis=1).astype(jnp.int32)                    # (num_bt,)

    # Compact hit tile indices to the front (ascending), sentinel after.
    keys = jnp.where(hits > 0, jnp.arange(num_vt, dtype=jnp.int32)[None, :],
                     num_vt)
    hit_sorted = jnp.sort(keys, axis=1)

    # Static bound on the vocab grid dim: a batch tile hits <= tb*S tiles.
    n_grid_v = int(min(num_vt, tb * S))
    hit_tiles = hit_sorted[:, :n_grid_v]
    # Replace sentinels with the last valid tile index: the repeated block
    # index means Pallas skips the DMA, and pl.when skips the compute.
    last_valid = jnp.take_along_axis(hit_tiles,
                                     jnp.maximum(n_hit - 1, 0)[:, None], axis=1)
    hit_tiles = jnp.where(hit_tiles >= num_vt, last_valid,
                          hit_tiles).astype(jnp.int32)

    # --- Static kernel parameters ------------------------------------------
    strip = 512 if tv % 512 == 0 else tv
    count_dtype = jnp.bfloat16 if S <= 256 else jnp.float32  # exactness guard

    vmem_needed = (2 * tv * Dp * 2                 # emb tile, double-buffered
                   + 2 * (Dp * Hp + Hp * Cp) * 2   # W1 / W2 (bf16)
                   + 2 * (Hp + Cp) * 4             # biases
                   + tb * Dp * 4                   # acc scratch
                   + 2 * tb * Cp * 4               # output buffers
                   + 2 * tb * (S + 1) * 4)         # ids + lens
    vmem_limit = int(min(max(2 * vmem_needed, 32 << 20), 48 << 20))

    grid = (num_bt, n_grid_v)
    kernel = functools.partial(dan_kernel, strip=strip, count_dtype=count_dtype)

    out = pl.pallas_call(
        kernel,
        out_shape=jax.ShapeDtypeStruct((Bp, Cp), jnp.float32),
        grid_spec=pltpu.PrefetchScalarGridSpec(
            num_scalar_prefetch=2,                 # hit_tiles, n_hit -> SMEM
            grid=grid,
            in_specs=[
                pl.BlockSpec((tb, S), lambda i, v, *_: (i, 0)),       # token ids
                pl.BlockSpec((tb, 1), lambda i, v, *_: (i, 0)),       # lengths
                pl.BlockSpec((tv, Dp),
                             lambda i, v, hit, nh: (hit[i, v], 0)),   # emb tile
                pl.BlockSpec((Dp, Hp), lambda i, v, *_: (0, 0)),      # W1
                pl.BlockSpec((1, Hp), lambda i, v, *_: (0, 0)),       # b1
                pl.BlockSpec((Hp, Cp), lambda i, v, *_: (0, 0)),      # W2
                pl.BlockSpec((1, Cp), lambda i, v, *_: (0, 0)),       # b2
            ],
            out_specs=pl.BlockSpec((tb, Cp), lambda i, v, *_: (i, 0)),
            scratch_shapes=[pltpu.VMEM((tb, Dp), jnp.float32)],       # emb-sum acc
        ),
        compiler_params=pltpu.CompilerParams(
            dimension_semantics=("parallel", "arbitrary"),
            vmem_limit_bytes=vmem_limit),
    )(hit_tiles, n_hit, ids_p, len_p,
      params["emb"], params["w1"], params["b1"], params["w2"], params["b2"])

    return out[:B, :C]


def dan_reference(ids, text_len, emb, w1, b1, w2, b2):
    """Pure-JAX f32 reference matching the PyTorch forward."""
    text_embed = emb[ids]                        # (B, S, D)
    encoded = text_embed.sum(axis=1) / text_len  # (B, D)
    h = jnp.maximum(encoded @ w1 + b1, 0.0)
    logits = h @ w2 + b2
    return jax.nn.softmax(logits, axis=-1)


if __name__ == "__main__":
    # Small synthetic shapes consistent with the module.
    B, S = 2, 8          # batch, sequence length
    V, D = 64, 32        # vocab_size, emb_dim (word_vectors.vectors.shape)
    H, C = 32, 16        # n_hidden_units, n_classes

    key = jax.random.PRNGKey(0)
    k_emb, k_w1, k_b1, k_w2, k_b2, k_ids, k_len = jax.random.split(key, 7)

    emb = jax.random.normal(k_emb, (V, D), dtype=jnp.float32) * 0.1
    w1 = jax.random.normal(k_w1, (D, H), dtype=jnp.float32) * 0.1
    b1 = jax.random.normal(k_b1, (1, H), dtype=jnp.float32) * 0.1
    w2 = jax.random.normal(k_w2, (H, C), dtype=jnp.float32) * 0.1
    b2 = jax.random.normal(k_b2, (1, C), dtype=jnp.float32) * 0.1

    ids = jax.random.randint(k_ids, (B, S), 0, V, dtype=jnp.int32)
    text_len = jax.random.randint(k_len, (B, 1), 1, S + 1).astype(jnp.float32)

    params = prepare_params(emb, w1, b1, w2, b2)     # one-time pad + bf16 cast
    out = dan_forward(ids, text_len, params)
    out = jax.block_until_ready(out)

    ref = dan_reference(ids, text_len, emb, w1, b1, w2, b2)
    # bf16 MXU operands vs the f32 reference -> loosened tolerance.
    np.testing.assert_allclose(np.asarray(out), np.asarray(ref),
                               rtol=2e-2, atol=2e-2)
    print("KERNEL_OK")
</pallas_src>

<mosaic_0001>
module attributes {stable_mosaic.version = 11 : i64} {
  func.func @dan_kernel(%arg0: i32, %arg1: i32, %arg2: memref<1x1xi32, #tpu.memory_space<smem>>, %arg3: memref<1xi32, #tpu.memory_space<smem>>, %arg4: memref<128x8xi32, #tpu.memory_space<vmem>>, %arg5: memref<128x1xf32, #tpu.memory_space<vmem>>, %arg6: memref<64x128xbf16, #tpu.memory_space<vmem>>, %arg7: memref<128x128xbf16, #tpu.memory_space<vmem>>, %arg8: memref<1x128xf32, #tpu.memory_space<vmem>>, %arg9: memref<128x128xbf16, #tpu.memory_space<vmem>>, %arg10: memref<1x128xf32, #tpu.memory_space<vmem>>, %arg11: memref<128x128xf32, #tpu.memory_space<vmem>>, %arg12: memref<128x128xf32, #tpu.memory_space<vmem>>) attributes {dimension_semantics = [#tpu.dimension_semantics<parallel>, #tpu.dimension_semantics<arbitrary>], iteration_bounds = array<i64: 1, 1>, scalar_prefetch = 2 : i64, scratch_operands = 1 : i64, tpu.core_type = #tpu.core_type<tc>, window_params = [{transform_indices = @transform_0, window_bounds = array<i64: 128, 8>}, {transform_indices = @transform_1, window_bounds = array<i64: 128, 1>}, {transform_indices = @transform_2, window_bounds = array<i64: 64, 128>}, {pipeline_mode = #tpu.pipeline_mode<synchronous>, transform_indices = @transform_3, window_bounds = array<i64: 128, 128>}, {pipeline_mode = #tpu.pipeline_mode<synchronous>, transform_indices = @transform_4, window_bounds = array<i64: 1, 128>}, {pipeline_mode = #tpu.pipeline_mode<synchronous>, transform_indices = @transform_5, window_bounds = array<i64: 128, 128>}, {pipeline_mode = #tpu.pipeline_mode<synchronous>, transform_indices = @transform_6, window_bounds = array<i64: 1, 128>}, {transform_indices = @transform_7, window_bounds = array<i64: 128, 128>}]} {
    %c0_i32 = arith.constant 0 : i32
    %0 = arith.cmpi eq, %arg1, %c0_i32 : i32
    %1 = arith.extui %0 : i1 to i32
    %c0_i32_0 = arith.constant 0 : i32
    %2 = arith.cmpi ne, %1, %c0_i32_0 : i32
    scf.if %2 {
      %cst = arith.constant 0.000000e+00 : f32
      %11 = vector.broadcast %cst : f32 to vector<128x128xf32>
      %c0 = arith.constant 0 : index
      %c0_4 = arith.constant 0 : index
      %12 = vector.load %arg12[%c0, %c0_4] : memref<128x128xf32, #tpu.memory_space<vmem>>, vector<128x128xf32>
      tpu.vector_store %arg12[%c0, %c0_4], %11 {strides = array<i32>} : memref<128x128xf32, #tpu.memory_space<vmem>>, vector<128x128xf32>,
    } else {
    }
    %3 = arith.index_cast %arg0 : i32 to index
    %4 = memref.load %arg3[%3] : memref<1xi32, #tpu.memory_space<smem>>
    %5 = arith.cmpi slt, %arg1, %4 : i32
    %6 = arith.extui %5 : i1 to i32
    %c0_i32_1 = arith.constant 0 : i32
    %7 = arith.cmpi ne, %6, %c0_i32_1 : i32
    scf.if %7 {
      %11 = arith.index_cast %arg0 : i32 to index
      %12 = arith.index_cast %arg1 : i32 to index
      %13 = memref.load %arg2[%11, %12] : memref<1x1xi32, #tpu.memory_space<smem>>
      %c64_i32 = arith.constant 64 : i32
      %14 = arith.muli %13, %c64_i32 : i32
      %c0 = arith.constant 0 : index
      %c0_4 = arith.constant 0 : index
      %15 = vector.load %arg4[%c0, %c0_4] : memref<128x8xi32, #tpu.memory_space<vmem>>, vector<128x8xi32>
      %16 = tpu.iota {dimensions = array<i32: 1>} : vector<128x64xi32>
      %c0_i32_5 = arith.constant 0 : i32
      %17 = arith.addi %14, %c0_i32_5 : i32
      %18 = vector.broadcast %17 : i32 to vector<128x64xi32>
      %19 = arith.addi %16, %18 : vector<128x64xi32>
      %c0_i32_6 = arith.constant 0 : i32
      %20 = vector.broadcast %c0_i32_6 : i32 to vector<128x64xi32>
      %21 = vector.extract_strided_slice %15 {offsets = [0, 0], sizes = [128, 1], strides = [1, 1]} : vector<128x8xi32> to vector<128x1xi32>
      %22 = vector.broadcast %21 : vector<128x1xi32> to vector<128x64xi32>
      %23 = arith.cmpi eq, %22, %19 : vector<128x64xi32>
      %24 = arith.extui %23 : vector<128x64xi1> to vector<128x64xi32>
      %25 = arith.addi %20, %24 : vector<128x64xi32>
      %26 = vector.extract_strided_slice %15 {offsets = [0, 1], sizes = [128, 1], strides = [1, 1]} : vector<128x8xi32> to vector<128x1xi32>
      %27 = vector.broadcast %26 : vector<128x1xi32> to vector<128x64xi32>
      %28 = arith.cmpi eq, %27, %19 : vector<128x64xi32>
      %29 = arith.extui %28 : vector<128x64xi1> to vector<128x64xi32>
      %30 = arith.addi %25, %29 : vector<128x64xi32>
      %31 = vector.extract_strided_slice %15 {offsets = [0, 2], sizes = [128, 1], strides = [1, 1]} : vector<128x8xi32> to vector<128x1xi32>
      %32 = vector.broadcast %31 : vector<128x1xi32> to vector<128x64xi32>
      %33 = arith.cmpi eq, %32, %19 : vector<128x64xi32>
      %34 = arith.extui %33 : vector<128x64xi1> to vector<128x64xi32>
      %35 = arith.addi %30, %34 : vector<128x64xi32>
      %36 = vector.extract_strided_slice %15 {offsets = [0, 3], sizes = [128, 1], strides = [1, 1]} : vector<128x8xi32> to vector<128x1xi32>
      %37 = vector.broadcast %36 : vector<128x1xi32> to vector<128x64xi32>
      %38 = arith.cmpi eq, %37, %19 : vector<128x64xi32>
      %39 = arith.extui %38 : vector<128x64xi1> to vector<128x64xi32>
      %40 = arith.addi %35, %39 : vector<128x64xi32>
      %41 = vector.extract_strided_slice %15 {offsets = [0, 4], sizes = [128, 1], strides = [1, 1]} : vector<128x8xi32> to vector<128x1xi32>
      %42 = vector.broadcast %41 : vector<128x1xi32> to vector<128x64xi32>
      %43 = arith.cmpi eq, %42, %19 : vector<128x64xi32>
      %44 = arith.extui %43 : vector<128x64xi1> to vector<128x64xi32>
      %45 = arith.addi %40, %44 : vector<128x64xi32>
      %46 = vector.extract_strided_slice %15 {offsets = [0, 5], sizes = [128, 1], strides = [1, 1]} : vector<128x8xi32> to vector<128x1xi32>
      %47 = vector.broadcast %46 : vector<128x1xi32> to vector<128x64xi32>
      %48 = arith.cmpi eq, %47, %19 : vector<128x64xi32>
      %49 = arith.extui %48 : vector<128x64xi1> to vector<128x64xi32>
      %50 = arith.addi %45, %49 : vector<128x64xi32>
      %51 = vector.extract_strided_slice %15 {offsets = [0, 6], sizes = [128, 1], strides = [1, 1]} : vector<128x8xi32> to vector<128x1xi32>
      %52 = vector.broadcast %51 : vector<128x1xi32> to vector<128x64xi32>
      %53 = arith.cmpi eq, %52, %19 : vector<128x64xi32>
      %54 = arith.extui %53 : vector<128x64xi1> to vector<128x64xi32>
      %55 = arith.addi %50, %54 : vector<128x64xi32>
      %56 = vector.extract_strided_slice %15 {offsets = [0, 7], sizes = [128, 1], strides = [1, 1]} : vector<128x8xi32> to vector<128x1xi32>
      %57 = vector.broadcast %56 : vector<128x1xi32> to vector<128x64xi32>
      %58 = arith.cmpi eq, %57, %19 : vector<128x64xi32>
      %59 = arith.extui %58 : vector<128x64xi1> to vector<128x64xi32>
      %60 = arith.addi %55, %59 : vector<128x64xi32>
      %c0_7 = arith.constant 0 : index
      %c0_8 = arith.constant 0 : index
      %61 = vector.load %arg12[%c0_7, %c0_8] : memref<128x128xf32, #tpu.memory_space<vmem>>, vector<128x128xf32>
      %62 = arith.sitofp %60 : vector<128x64xi32> to vector<128x64xbf16>
      %c0_9 = arith.constant 0 : index
      %c0_10 = arith.constant 0 : index
      %63 = vector.load %arg6[%c0_9, %c0_10] : memref<64x128xbf16, #tpu.memory_space<vmem>>, vector<64x128xbf16>
      %cst = arith.constant dense<0.000000e+00> : vector<128x128xf32>
      %64 = tpu.matmul %62, %63, %cst {dimension_numbers = #tpu.dot_dimension_numbers<[1], [0], [0], [1], [0, 0, 1, 1], [], []>} : vector<128x64xbf16>, vector<64x128xbf16>, vector<128x128xf32> -> vector<128x128xf32>
      %65 = arith.addf %61, %64 : vector<128x128xf32>
      %c0_11 = arith.constant 0 : index
      %c0_12 = arith.constant 0 : index
      %66 = vector.load %arg12[%c0_11, %c0_12] : memref<128x128xf32, #tpu.memory_space<vmem>>, vector<128x128xf32>
      tpu.vector_store %arg12[%c0_11, %c0_12], %65 {strides = array<i32>} : memref<128x128xf32, #tpu.memory_space<vmem>>, vector<128x128xf32>,
    } else {
    }
    %c0_i32_2 = arith.constant 0 : i32
    %8 = arith.cmpi eq, %arg1, %c0_i32_2 : i32
    %9 = arith.extui %8 : i1 to i32
    %c0_i32_3 = arith.constant 0 : i32
    %10 = arith.cmpi ne, %9, %c0_i32_3 : i32
    scf.if %10 {
      %c0 = arith.constant 0 : index
      %c0_4 = arith.constant 0 : index
      %11 = vector.load %arg5[%c0, %c0_4] : memref<128x1xf32, #tpu.memory_space<vmem>>, vector<128x1xf32>
      %12 = tpu.reciprocal %11 : vector<128x1xf32> -> vector<128x1xf32>
      %c0_5 = arith.constant 0 : index
      %c0_6 = arith.constant 0 : index
      %13 = vector.load %arg12[%c0_5, %c0_6] : memref<128x128xf32, #tpu.memory_space<vmem>>, vector<128x128xf32>
      %14 = vector.broadcast %12 : vector<128x1xf32> to vector<128x128xf32>
      %15 = arith.mulf %13, %14 : vector<128x128xf32>
      %16 = arith.truncf %15 : vector<128x128xf32> to vector<128x128xbf16>
      %c0_7 = arith.constant 0 : index
      %c0_8 = arith.constant 0 : index
      %17 = vector.load %arg7[%c0_7, %c0_8] : memref<128x128xbf16, #tpu.memory_space<vmem>>, vector<128x128xbf16>
      %cst = arith.constant dense<0.000000e+00> : vector<128x128xf32>
      %18 = tpu.matmul %16, %17, %cst {dimension_numbers = #tpu.dot_dimension_numbers<[1], [0], [0], [1], [0, 0, 1, 1], [], []>} : vector<128x128xbf16>, vector<128x128xbf16>, vector<128x128xf32> -> vector<128x128xf32>
      %c0_9 = arith.constant 0 : index
      %c0_10 = arith.constant 0 : index
      %19 = vector.load %arg8[%c0_9, %c0_10] : memref<1x128xf32, #tpu.memory_space<vmem>>, vector<1x128xf32>
      %20 = vector.broadcast %19 : vector<1x128xf32> to vector<128x128xf32>
      %21 = arith.addf %18, %20 : vector<128x128xf32>
      %cst_11 = arith.constant 0.000000e+00 : f32
      %22 = vector.broadcast %cst_11 : f32 to vector<128x128xf32>
      %23 = arith.maximumf %21, %22 : vector<128x128xf32>
      %24 = arith.truncf %23 : vector<128x128xf32> to vector<128x128xbf16>
      %c0_12 = arith.constant 0 : index
      %c0_13 = arith.constant 0 : index
      %25 = vector.load %arg9[%c0_12, %c0_13] : memref<128x128xbf16, #tpu.memory_space<vmem>>, vector<128x128xbf16>
      %cst_14 = arith.constant dense<0.000000e+00> : vector<128x128xf32>
      %26 = tpu.matmul %24, %25, %cst_14 {dimension_numbers = #tpu.dot_dimension_numbers<[1], [0], [0], [1], [0, 0, 1, 1], [], []>} : vector<128x128xbf16>, vector<128x128xbf16>, vector<128x128xf32> -> vector<128x128xf32>
      %c0_15 = arith.constant 0 : index
      %c0_16 = arith.constant 0 : index
      %27 = vector.load %arg10[%c0_15, %c0_16] : memref<1x128xf32, #tpu.memory_space<vmem>>, vector<1x128xf32>
      %28 = vector.broadcast %27 : vector<1x128xf32> to vector<128x128xf32>
      %29 = arith.addf %26, %28 : vector<128x128xf32>
      %cst_17 = arith.constant dense<0xFF800000> : vector<128xf32>
      %30 = vector.multi_reduction <maximumf>, %29, %cst_17 [1] : vector<128x128xf32> to vector<128xf32>
      %31 = vector.shape_cast %30 : vector<128xf32> to vector<128x1xf32>
      %32 = vector.broadcast %31 : vector<128x1xf32> to vector<128x128xf32>
      %33 = arith.subf %29, %32 : vector<128x128xf32>
      %34 = math.exp %33 : vector<128x128xf32>
      %cst_18 = arith.constant dense<0.000000e+00> : vector<128xf32>
      %35 = vector.multi_reduction <add>, %34, %cst_18 [1] : vector<128x128xf32> to vector<128xf32>
      %36 = vector.shape_cast %35 : vector<128xf32> to vector<128x1xf32>
      %37 = tpu.reciprocal %36 : vector<128x1xf32> -> vector<128x1xf32>
      %38 = vector.broadcast %37 : vector<128x1xf32> to vector<128x128xf32>
      %39 = arith.mulf %34, %38 : vector<128x128xf32>
      %c0_19 = arith.constant 0 : index
      %c0_20 = arith.constant 0 : index
      %40 = vector.load %arg11[%c0_19, %c0_20] : memref<128x128xf32, #tpu.memory_space<vmem>>, vector<128x128xf32>
      tpu.vector_store %arg11[%c0_19, %c0_20], %39 {strides = array<i32>} : memref<128x128xf32, #tpu.memory_space<vmem>>, vector<128x128xf32>,
    } else {
    }
    return
  }
  func.func @transform_0(%arg0: i32, %arg1: i32, %arg2: memref<1x1xi32, #tpu.memory_space<smem>>, %arg3: memref<1xi32, #tpu.memory_space<smem>>) -> (i32, i32) {
    %c0_i32 = arith.constant 0 : i32
    %c0_i32_0 = arith.constant 0 : i32
    return %arg0, %c0_i32 : i32, i32
  }
  func.func @transform_1(%arg0: i32, %arg1: i32, %arg2: memref<1x1xi32, #tpu.memory_space<smem>>, %arg3: memref<1xi32, #tpu.memory_space<smem>>) -> (i32, i32) {
    %c0_i32 = arith.constant 0 : i32
    %c0_i32_0 = arith.constant 0 : i32
    return %arg0, %c0_i32 : i32, i32
  }
  func.func @transform_2(%arg0: i32, %arg1: i32, %arg2: memref<1x1xi32, #tpu.memory_space<smem>>, %arg3: memref<1xi32, #tpu.memory_space<smem>>) -> (i32, i32) {
    %0 = arith.index_cast %arg0 : i32 to index
    %1 = arith.index_cast %arg1 : i32 to index
    %2 = memref.load %arg2[%0, %1] : memref<1x1xi32, #tpu.memory_space<smem>>
    %c0_i32 = arith.constant 0 : i32
    %c0_i32_0 = arith.constant 0 : i32
    return %2, %c0_i32 : i32, i32
  }
  func.func @transform_3(%arg0: i32, %arg1: i32, %arg2: memref<1x1xi32, #tpu.memory_space<smem>>, %arg3: memref<1xi32, #tpu.memory_space<smem>>) -> (i32, i32) {
    %c0_i32 = arith.constant 0 : i32
    %c0_i32_0 = arith.constant 0 : i32
    %c0_i32_1 = arith.constant 0 : i32
    return %c0_i32, %c0_i32_0 : i32, i32
  }
  func.func @transform_4(%arg0: i32, %arg1: i32, %arg2: memref<1x1xi32, #tpu.memory_space<smem>>, %arg3: memref<1xi32, #tpu.memory_space<smem>>) -> (i32, i32) {
    %c0_i32 = arith.constant 0 : i32
    %c0_i32_0 = arith.constant 0 : i32
    %c0_i32_1 = arith.constant 0 : i32
    return %c0_i32, %c0_i32_0 : i32, i32
  }
  func.func @transform_5(%arg0: i32, %arg1: i32, %arg2: memref<1x1xi32, #tpu.memory_space<smem>>, %arg3: memref<1xi32, #tpu.memory_space<smem>>) -> (i32, i32) {
    %c0_i32 = arith.constant 0 : i32
    %c0_i32_0 = arith.constant 0 : i32
    %c0_i32_1 = arith.constant 0 : i32
    return %c0_i32, %c0_i32_0 : i32, i32
  }
  func.func @transform_6(%arg0: i32, %arg1: i32, %arg2: memref<1x1xi32, #tpu.memory_space<smem>>, %arg3: memref<1xi32, #tpu.memory_space<smem>>) -> (i32, i32) {
    %c0_i32 = arith.constant 0 : i32
    %c0_i32_0 = arith.constant 0 : i32
    %c0_i32_1 = arith.constant 0 : i32
    return %c0_i32, %c0_i32_0 : i32, i32
  }
  func.func @transform_7(%arg0: i32, %arg1: i32, %arg2: memref<1x1xi32, #tpu.memory_space<smem>>, %arg3: memref<1xi32, #tpu.memory_space<smem>>) -> (i32, i32) {
    %c0_i32 = arith.constant 0 : i32
    %c0_i32_0 = arith.constant 0 : i32
    return %arg0, %c0_i32 : i32, i32
  }
}

</mosaic_0001>

<bundles_post_ra>
// kernel: tpu_custom_call.1
= control target key start
LH: loop header
LB: loop body
LE: loop exit
PB: predicated region body
PF: predicated region fallthrough
CT: control target
= control target key end

     0   :  { %s3269_s0 = inlined_call_operand.<no memory space> [shape: s32[1,1], index: 0, kind: input, shape index: {}]   ;;  %s3270_s1 = inlined_call_operand.<no memory space> [shape: s32[1], index: 1, kind: input, shape index: {}]   ;;  %s3271_s2 = inlined_call_operand.vmem [shape: s32[128,8], index: 2, kind: input, shape index: {}]   ;;  %s3272_s3 = inlined_call_operand.vmem [shape: f32[128,1], index: 3, kind: input, shape index: {}]   ;;  %s3273_s4 = inlined_call_operand.vmem [shape: bf16[64,128], index: 4, kind: input, shape index: {}]   ;;  %s3274_s5 = inlined_call_operand.vmem [shape: bf16[128,128], index: 5, kind: input, shape index: {}]   ;;  %s3275_s6 = inlined_call_operand.vmem [shape: f32[1,128], index: 6, kind: input, shape index: {}]   ;;  %s3276_s7 = inlined_call_operand.vmem [shape: bf16[128,128], index: 7, kind: input, shape index: {}]   ;;  %s3277_s8 = inlined_call_operand.vmem [shape: f32[1,128], index: 8, kind: input, shape index: {}]   ;;  %s3278_s9 = inlined_call_operand.hbm [shape: f32[128,128], index: 9, kind: output, shape index: {}]  }
   0x1   :  { %14 = sst [smem:[#allocation4]] %s3269_s0 }
   0x2   :  { %16 = vsyncpa [#allocation7], 0  ;;  %s57_s11 = sld [smem:[#allocation4]]  ;;  %v2147_v0 = vmov 0.0   ;;  %p1797_p1 = scmp.le.s32.totalorder %s3270_s1, 0 }
   0x3   :  { %73 = vst [vmem:[#allocation2] sm:$0xff] %v2147_v0  ;;  %74 = vst [vmem:[#allocation2 + $0x8] sm:$0xff] %v2147_v0  ;;  %v2224_v1 = vld [vmem:[%s3271_s2 + $0x10] sm:$0xff] (!%p1797_p1)  ;;  %v2229_v2 = vld [vmem:[%s3271_s2] sm:$0xff] (!%p1797_p1)  ;;  %v2148_v3 = vmov (!%p1797_p1), 0   ;;  %v2149_v18 = vmov (!%p1797_p1), 1   ;;  %v115_v63 = vlaneseq (!%p1797_p1) }
   0x4   :  { %75 = vst [vmem:[#allocation2 + $0x10] sm:$0xff] %v2147_v0  ;;  %76 = vst [vmem:[#allocation2 + $0x18] sm:$0xff] %v2147_v0  ;;  %1983 = vset.pattern.permute.xlu1 (!%p1797_p1), %v2148_v3  ;;  %1982 = vset.pattern.permute.xlu0 (!%p1797_p1), %v2148_v3  ;;  %v2238_v4 = vld [vmem:[%s3271_s2 + $0x18] sm:$0xff] (!%p1797_p1)  ;;  %v2243_v5 = vld [vmem:[%s3271_s2 + $0x8] sm:$0xff] (!%p1797_p1)  ;;  %v2150_v19 = vmov (!%p1797_p1), 2   ;;  %v2151_v20 = vmov (!%p1797_p1), 3  }
   0x5   :  { %77 = vst [vmem:[#allocation2 + $0x20] sm:$0xff] %v2147_v0  ;;  %78 = vst [vmem:[#allocation2 + $0x28] sm:$0xff] %v2147_v0  ;;  %126 = vperm.xlu1 (!%p1797_p1), %1983, %v2224_v1   ;;  %120 = vperm.xlu0 (!%p1797_p1), %1982, %v2229_v2   ;;  %v2248_v6 = vld [vmem:[%s3271_s2 + $0x28] sm:$0xff] (!%p1797_p1)  ;;  %v2253_v7 = vld [vmem:[%s3271_s2 + $0x20] sm:$0xff] (!%p1797_p1)  ;;  %v2152_v21 = vmov (!%p1797_p1), 4   ;;  %v3281_v30 = vmov (!%p1797_p1), 5  }
   0x6   :  { %79 = vst [vmem:[#allocation2 + $0x30] sm:$0xff] %v2147_v0  ;;  %80 = vst [vmem:[#allocation2 + $0x38] sm:$0xff] %v2147_v0  ;;  %v2262_v8 = vld [vmem:[%s3271_s2 + $0x38] sm:$0xff] (!%p1797_p1)  ;;  %v2267_v9 = vld [vmem:[%s3271_s2 + $0x30] sm:$0xff] (!%p1797_p1)  ;;  %v3279_v39 = vmov (!%p1797_p1), 6   ;;  %v3280_v54 = vmov (!%p1797_p1), 7  }
   0x7   :  { %81 = vst [vmem:[#allocation2 + $0x40] sm:$0xff] %v2147_v0  ;;  %82 = vst [vmem:[#allocation2 + $0x48] sm:$0xff] %v2147_v0  ;;  %93 = sbr.rel (%p1797_p1) target bundleno = 653 (0x28d), region = 37  ;;  %v2274_v10 = vld [vmem:[%s3271_s2 + $0x48] sm:$0xff] (!%p1797_p1)  ;;  %v2279_v11 = vld [vmem:[%s3271_s2 + $0x40] sm:$0xff] (!%p1797_p1) }
   0x8   :  { %83 = vst [vmem:[#allocation2 + $0x50] sm:$0xff] %v2147_v0  ;;  %84 = vst [vmem:[#allocation2 + $0x58] sm:$0xff] %v2147_v0  ;;  %s1794_s0 = sshll.u32 %s57_s11, 3  ;;  %v2286_v12 = vld [vmem:[%s3271_s2 + $0x58] sm:$0xff] (!%p1797_p1)  ;;  %v2291_v13 = vld [vmem:[%s3271_s2 + $0x50] sm:$0xff] (!%p1797_p1) }
   0x9   :  { %85 = vst [vmem:[#allocation2 + $0x60] sm:$0xff] %v2147_v0  ;;  %86 = vst [vmem:[#allocation2 + $0x68] sm:$0xff] %v2147_v0  ;;  %p59_p0 = scmp.lt.s32.totalorder %s1794_s0, 7  ;;  %129 = vperm.xlu1 (!%p1797_p1), %1983, %v2238_v4   ;;  %123 = vperm.xlu0 (!%p1797_p1), %1982, %v2243_v5   ;;  %v2298_v14 = vld [vmem:[%s3271_s2 + $0x68] sm:$0xff] (!%p1797_p1)  ;;  %v2303_v15 = vld [vmem:[%s3271_s2 + $0x60] sm:$0xff] (!%p1797_p1) }
   0xa   :  { %87 = vst [vmem:[#allocation2 + $0x70] sm:$0xff] %v2147_v0  ;;  %88 = vst [vmem:[#allocation2 + $0x78] sm:$0xff] %v2147_v0  ;;  %v2310_v16 = vld [vmem:[%s3271_s2 + $0x78] sm:$0xff] (!%p1797_p1)  ;;  %v2315_v17 = vld [vmem:[%s3271_s2 + $0x70] sm:$0xff] (!%p1797_p1)  ;;  %s97_s2 = sld [smem:[#allocation4]] (!%p1797_p1) }
   0xb   :  { %s3286_s0 = smov (!%p59_p0, %s1794_s0), 7 }
   0xc   :  { %s1795_s12 = sshll.u32 %s3286_s0, 2 }
   0xd   :  { %s2216_s15 = scalar_lea.vmem %s3273_s4, %s1795_s12  ;;  %135 = vperm.xlu1 (!%p1797_p1), %1983, %v2248_v6   ;;  %132 = vperm.xlu0 (!%p1797_p1), %1982, %v2253_v7  }
  0x10   :  { %s1798_s25 = sshll.u32 %s97_s2, 6 }
  0x11   :  { %141 = vperm.xlu1 %1983, %v2262_v8   ;;  %138 = vperm.xlu0 %1982, %v2267_v9  }
  0x15   :  { %147 = vperm.xlu1 %1983, %v2274_v10   ;;  %144 = vperm.xlu0 %1982, %v2279_v11  }
  0x19   :  { %153 = vperm.xlu1 %1983, %v2286_v12   ;;  %150 = vperm.xlu0 %1982, %v2291_v13  }
  0x1d   :  { %159 = vperm.xlu1 %1983, %v2298_v14   ;;  %156 = vperm.xlu0 %1982, %v2303_v15  }
  0x21   :  { %165 = vperm.xlu1 %1983, %v2310_v16   ;;  %162 = vperm.xlu0 %1982, %v2315_v17  }
  0x25   :  { %1985 = vset.pattern.permute.xlu1 %v2149_v18  ;;  %1984 = vset.pattern.permute.xlu0 %v2149_v18  ;;  %v2005_v18 = vld [vmem:[%s2216_s15] sm:$0xff]  }
  0x26   :  { %203 = vperm.xlu1 %1985, %v2243_v5   ;;  %200 = vperm.xlu0 %1984, %v2229_v2  }
  0x27   :  { %1961 = vmatprep.subr.bf16.mxu1 %v2005_v18  ;;  %1873 = vmatprep.subr.bf16.mxu0 %v2005_v18 }
  0x28   :  { %1965 = vmatpush3.bf16.msra.mxu1 %v2005_v18  ;;  %1874 = vmatpush3.bf16.msra.mxu0 %v2005_v18 }
  0x2a   :  { %206 = vperm.xlu1 %1985, %v2224_v1   ;;  %209 = vperm.xlu0 %1984, %v2238_v4  }
  0x2e   :  { %212 = vperm.xlu1 %1985, %v2253_v7   ;;  %215 = vperm.xlu0 %1984, %v2248_v6  }
  0x32   :  { %218 = vperm.xlu1 %1985, %v2267_v9   ;;  %221 = vperm.xlu0 %1984, %v2262_v8  }
  0x36   :  { %224 = vperm.xlu1 %1985, %v2279_v11   ;;  %227 = vperm.xlu0 %1984, %v2274_v10  }
  0x3a   :  { %230 = vperm.xlu1 %1985, %v2291_v13   ;;  %233 = vperm.xlu0 %1984, %v2286_v12  }
  0x3e   :  { %236 = vperm.xlu1 %1985, %v2303_v15   ;;  %239 = vperm.xlu0 %1984, %v2298_v14  }
  0x42   :  { %242 = vperm.xlu1 %1985, %v2315_v17   ;;  %245 = vperm.xlu0 %1984, %v2310_v16  }
  0x46   :  { %1986 = vset.pattern.permute.xlu1 %v2150_v19  ;;  %1987 = vset.pattern.permute.xlu0 %v2150_v19 }
  0x47   :  { %296 = vperm.xlu1 %1986, %v2229_v2   ;;  %299 = vperm.xlu0 %1987, %v2243_v5  }
  0x4b   :  { %302 = vperm.xlu1 %1986, %v2224_v1   ;;  %308 = vperm.xlu0 %1987, %v2253_v7  }
  0x4f   :  { %305 = vperm.xlu1 %1986, %v2238_v4   ;;  %314 = vperm.xlu0 %1987, %v2267_v9  }
  0x53   :  { %311 = vperm.xlu1 %1986, %v2248_v6   ;;  %320 = vperm.xlu0 %1987, %v2279_v11  }
  0x57   :  { %317 = vperm.xlu1 %1986, %v2262_v8   ;;  %326 = vperm.xlu0 %1987, %v2291_v13  }
  0x5b   :  { %323 = vperm.xlu1 %1986, %v2274_v10   ;;  %332 = vperm.xlu0 %1987, %v2303_v15  }
  0x5f   :  { %329 = vperm.xlu1 %1986, %v2286_v12   ;;  %338 = vperm.xlu0 %1987, %v2315_v17  }
  0x63   :  { %335 = vperm.xlu1 %1986, %v2298_v14   ;;  %1988 = vset.pattern.permute.xlu0 %v2151_v20 }
  0x64   :  { %392 = vperm.xlu0 %1988, %v2229_v2  }
  0x67   :  { %341 = vperm.xlu1 %1986, %v2310_v16  }
  0x68   :  { %401 = vperm.xlu0 %1988, %v2238_v4  }
  0x6b   :  { %1989 = vset.pattern.permute.xlu1 %v2151_v20 }
  0x6c   :  { %395 = vperm.xlu1 %1989, %v2243_v5   ;;  %419 = vperm.xlu0 %1988, %v2274_v10  }
  0x70   :  { %398 = vperm.xlu1 %1989, %v2224_v1   ;;  %425 = vperm.xlu0 %1988, %v2286_v12  }
  0x74   :  { %416 = vperm.xlu1 %1989, %v2279_v11   ;;  %404 = vperm.xlu0 %1988, %v2253_v7  }
  0x78   :  { %422 = vperm.xlu1 %1989, %v2291_v13   ;;  %431 = vperm.xlu0 %1988, %v2298_v14  }
  0x7c   :  { %1990 = vset.pattern.permute.xlu1 %v2152_v21  ;;  %410 = vperm.xlu0 %1988, %v2267_v9  }
  0x7d   :  { %488 = vperm.xlu1 %1990, %v2229_v2  }
  0x80   :  { %437 = vperm.xlu0 %1988, %v2310_v16  }
  0x81   :  { %512 = vperm.xlu1 %1990, %v2279_v11  }
  0x84   :  { %v2368_v22 = vpop.permute.xlu1 %126  ;;  %1996 = vset.pattern.permute.xlu0 %v2152_v21  ;;  %v2371_v23 = vpop.permute.xlu0 %120 }
  0x85   :  { %515 = vperm.xlu1 %1990, %v2274_v10   ;;  %491 = vperm.xlu0 %1996, %v2243_v5  }
  0x88   :  { %v2375_v24 = vpop.permute.xlu1 %129  ;;  %v2377_v25 = vpop.permute.xlu0 %123 }
  0x89   :  { %497 = vperm.xlu1 %1990, %v2238_v4   ;;  %494 = vperm.xlu0 %1996, %v2224_v1  }
  0x8c   :  { %v2381_v26 = vpop.permute.xlu1 %135  ;;  %v2383_v27 = vpop.permute.xlu0 %132 }
  0x8d   :  { %521 = vperm.xlu1 %1990, %v2286_v12   ;;  %518 = vperm.xlu0 %1996, %v2291_v13  }
  0x90   :  { %v2387_v28 = vpop.permute.xlu1 %141  ;;  %v2389_v29 = vpop.permute.xlu0 %138 }
  0x91   :  { %1991 = vset.pattern.permute.xlu1 %v3281_v30  ;;  %500 = vperm.xlu0 %1996, %v2253_v7  }
  0x92   :  { %587 = vperm.xlu1 %1991, %v2243_v5  }
  0x94   :  { %v2394_v31 = vpop.permute.xlu1 %147  ;;  %v2396_v32 = vpop.permute.xlu0 %144 }
  0x95   :  { %527 = vperm.xlu0 %1996, %v2298_v14  }
  0x96   :  { %608 = vperm.xlu1 %1991, %v2279_v11  }
  0x98   :  { %v2400_v33 = vpop.permute.xlu1 %153  ;;  %v2402_v34 = vpop.permute.xlu0 %150 }
  0x99   :  { %509 = vperm.xlu0 %1996, %v2262_v8  }
  0x9a   :  { %590 = vperm.xlu1 %1991, %v2224_v1  }
  0x9c   :  { %v2406_v35 = vpop.permute.xlu1 %159  ;;  %v2408_v36 = vpop.permute.xlu0 %156 }
  0x9d   :  { %533 = vperm.xlu0 %1996, %v2310_v16  }
  0x9e   :  { %614 = vperm.xlu1 %1991, %v2291_v13  }
  0xa0   :  { %v2412_v37 = vpop.permute.xlu1 %165  ;;  %v2414_v38 = vpop.permute.xlu0 %162 }
  0xa1   :  { %1999 = vset.pattern.permute.xlu0 %v3281_v30 }
  0xa2   :  { %1992 = vset.pattern.permute.xlu1 %v3279_v39  ;;  %584 = vperm.xlu0 %1999, %v2229_v2  }
  0xa3   :  { %680 = vperm.xlu1 %1992, %v2229_v2  }
  0xa5   :  { %v2420_v40 = vpop.permute.xlu1 %203  ;;  %v2422_v41 = vpop.permute.xlu0 %200 }
  0xa6   :  { %611 = vperm.xlu0 %1999, %v2274_v10  }
  0xa7   :  { %704 = vperm.xlu1 %1992, %v2279_v11  }
  0xa9   :  { %v2426_v42 = vpop.permute.xlu1 %206  ;;  %v2428_v43 = vpop.permute.xlu0 %209 }
  0xaa   :  { %593 = vperm.xlu0 %1999, %v2238_v4  }
  0xab   :  { %707 = vperm.xlu1 %1992, %v2274_v10  }
  0xad   :  { %v2432_v44 = vpop.permute.xlu1 %212  ;;  %v2434_v45 = vpop.permute.xlu0 %215 }
  0xae   :  { %617 = vperm.xlu0 %1999, %v2286_v12  }
  0xaf   :  { %689 = vperm.xlu1 %1992, %v2238_v4  }
  0xb1   :  { %v2438_v46 = vpop.permute.xlu1 %218  ;;  %v2440_v47 = vpop.permute.xlu0 %221 }
  0xb2   :  { %599 = vperm.xlu0 %1999, %v2248_v6  }
  0xb3   :  { %713 = vperm.xlu1 %1992, %v2286_v12  }
  0xb5   :  { %v2444_v48 = vpop.permute.xlu1 %224  ;;  %v2446_v49 = vpop.permute.xlu0 %227 }
  0xb6   :  { %602 = vperm.xlu0 %1999, %v2267_v9  }
  0xb7   :  { %1993 = vset.pattern.permute.xlu1 %v2151_v20 }
  0xb8   :  { %407 = vperm.xlu1 %1993, %v2248_v6  }
  0xb9   :  { %v2451_v50 = vpop.permute.xlu1 %230  ;;  %v234_v51 = vpop.permute.xlu0 %233 }
  0xba   :  { %626 = vperm.xlu0 %1999, %v2315_v17  }
  0xbc   :  { %428 = vperm.xlu1 %1993, %v2303_v15  }
  0xbd   :  { %v2455_v52 = vpop.permute.xlu1 %236  ;;  %v2457_v53 = vpop.permute.xlu0 %239 }
  0xbe   :  { %2001 = vset.pattern.permute.xlu0 %v3279_v39 }
  0xbf   :  { %683 = vperm.xlu0 %2001, %v2243_v5  }
  0xc0   :  { %1994 = vset.pattern.permute.xlu1 %v3280_v54 }
  0xc1   :  { %v2462_v55 = vpop.permute.xlu1 %242  ;;  %776 = vperm.xlu1 %1994, %v2229_v2   ;;  %v2465_v56 = vpop.permute.xlu0 %245 }
  0xc3   :  { %686 = vperm.xlu0 %2001, %v2224_v1  }
  0xc5   :  { %800 = vperm.xlu1 %1994, %v2279_v11   ;;  %v117_v11 = vstv %s1798_s25 }
  0xc6   :  { %v2469_v57 = vpop.permute.xlu1 %296  ;;  %v2471_v58 = vpop.permute.xlu0 %299 }
  0xc7   :  { %710 = vperm.xlu0 %2001, %v2291_v13  }
  0xc9   :  { %803 = vperm.xlu1 %1994, %v2274_v10   ;;  %v116_v10 = vand.u32 127, %v115_v63  ;;  %v2006_v63 = vld [vmem:[%s2216_s15 + $0x8] sm:$0xff]  }
  0xca   :  { %v2475_v59 = vpop.permute.xlu1 %302  ;;  %v2477_v60 = vpop.permute.xlu0 %308  ;;  %1962 = vmatprep.subr.bf16.mxu1 %v2006_v63  ;;  %1875 = vmatprep.subr.bf16.mxu0 %v2006_v63 }
  0xcb   :  { %692 = vperm.xlu0 %2001, %v2253_v7   ;;  %v2499_v39 = vadd.s32 %v117_v11, %v116_v10  ;;  %1966 = vmatpush3.bf16.msra.mxu1 %v2006_v63 }
  0xcc   :  { %1876 = vmatpush3.bf16.msra.mxu0 %v2006_v63 }
  0xcd   :  { %1995 = vset.pattern.permute.xlu1 %v2151_v20  ;;  %vm258_vm0 = vcmp.eq.s32.totalorder %v234_v51, %v2499_v39  ;;  %vm167_vm1 = vcmp.eq.s32.totalorder %v2371_v23, %v2499_v39  ;;  %vm247_vm2 = vcmp.eq.s32.totalorder %v2422_v41, %v2499_v39  ;;  %vm170_vm3 = vcmp.eq.s32.totalorder %v2375_v24, %v2499_v39 }
  0xce   :  { %413 = vperm.xlu1 %1995, %v2262_v8   ;;  %v2482_v61 = vpop.permute.xlu1 %305  ;;  %v2484_v62 = vpop.permute.xlu0 %314  ;;  %vm178_vm4 = vcmp.eq.s32.totalorder %v2400_v33, %v2499_v39  ;;  %vm168_vm5 = vcmp.eq.s32.totalorder %v2377_v25, %v2499_v39  ;;  %v183_v23 = vsel %vm167_vm1, 1, %v2148_v3  ;;  %v263_v41 = vsel %vm247_vm2, 1, %v2148_v3 }
  0xcf   :  { %719 = vperm.xlu0 %2001, %v2298_v14   ;;  %vm260_vm6 = vcmp.eq.s32.totalorder %v2457_v53, %v2499_v39  ;;  %v186_v24 = vsel %vm170_vm3, 1, %v2148_v3  ;;  %v194_v33 = vsel %vm178_vm4, 1, %v2148_v3  ;;  %vm180_vm7 = vcmp.eq.s32.totalorder %v2406_v35, %v2499_v39  ;;  %v2008_v53 = vld [vmem:[%s2216_s15 + $0x18] sm:$0xff]  }
  0xd0   :  { %vm343_vm8 = vcmp.eq.s32.totalorder %v2469_v57, %v2499_v39  ;;  %v184_v18 = vsel %vm168_vm5, 1, %v2148_v3  ;;  %vm182_vm9 = vcmp.eq.s32.totalorder %v2412_v37, %v2499_v39  ;;  %v279_v30 = vadd.s32 %v263_v41, %v183_v23 }
  0xd1   :  { %vm250_vm11 = vcmp.eq.s32.totalorder %v2428_v43, %v2499_v39  ;;  %v276_v25 = vsel %vm260_vm6, 1, %v2148_v3  ;;  %vm176_vm12 = vcmp.eq.s32.totalorder %v2394_v31, %v2499_v39  ;;  %vm262_vm13 = vcmp.eq.s32.totalorder %v2465_v56, %v2499_v39 }
  0xd2   :  { %434 = vperm.xlu1 %1995, %v2315_v17   ;;  %v2488_v0 = vpop.permute.xlu1 %311  ;;  %v2490_v2 = vpop.permute.xlu0 %320  ;;  %v198_v23 = vsel %vm182_vm9, 1, %v2148_v3  ;;  %vm248_vm14 = vcmp.eq.s32.totalorder %v2420_v40, %v2499_v39  ;;  %vm346_vm15 = vcmp.eq.s32.totalorder %v2482_v61, %v2499_v39  ;;  %v266_v57 = vsel %vm250_vm11, 1, %v2148_v3 }
  0xd3   :  { %701 = vperm.xlu0 %2001, %v2262_v8   ;;  %v278_v41 = vsel %vm262_vm13, 1, %v2148_v3  ;;  %vm344_vm3 = vcmp.eq.s32.totalorder %v2471_v58, %v2499_v39  ;;  %v264_v56 = vsel %vm248_vm14, 1, %v2148_v3  ;;  %v192_v61 = vsel %vm176_vm12, 1, %v2148_v3 }
  0xd4   :  { %v294_v40 = vadd.s32 %v278_v41, %v198_v23  ;;  %v280_v31 = vadd.s32 %v264_v56, %v184_v18  ;;  %vm251_vm9 = vcmp.eq.s32.totalorder %v2432_v44, %v2499_v39  ;;  %vm347_vm13 = vcmp.eq.s32.totalorder %v2477_v60, %v2499_v39 }
  0xd5   :  { %vm351_vm14 = vcmp.eq.s32.totalorder %v2490_v2, %v2499_v39  ;;  %v267_v60 = vsel %vm251_vm9, 1, %v2148_v3 }
  0xd6   :  { %1997 = vset.pattern.permute.xlu1 %v3280_v54  ;;  %v2495_v19 = vpop.permute.xlu1 %317  ;;  %v2497_v20 = vpop.permute.xlu0 %326 }
  0xd7   :  { %782 = vperm.xlu1 %1997, %v2224_v1   ;;  %725 = vperm.xlu0 %2001, %v2310_v16   ;;  %v274_v1 = vsel %vm258_vm0, 1, %v2148_v3  ;;  %vm256_vm0 = vcmp.eq.s32.totalorder %v2446_v49, %v2499_v39 }
  0xda   :  { %v2509_v10 = vpop.permute.xlu1 %323  ;;  %v2511_v11 = vpop.permute.xlu0 %332 }
  0xdb   :  { %806 = vperm.xlu1 %1997, %v2291_v13   ;;  %2003 = vset.pattern.permute.xlu0 %v3280_v54  ;;  %v2007_v13 = vld [vmem:[%s2216_s15 + $0x10] sm:$0xff]   ;;  %v290_v54 = vadd.s32 %v274_v1, %v194_v33  ;;  %vm352_vm4 = vcmp.eq.s32.totalorder %v2509_v10, %v2499_v39 }
  0xdc   :  { %779 = vperm.xlu0 %2003, %v2243_v5   ;;  %1963 = vmatprep.subr.bf16.mxu1 %v2007_v13  ;;  %v368_v49 = vsel %vm352_vm4, 1, %v2148_v3  ;;  %vm253_vm4 = vcmp.eq.s32.totalorder %v2438_v46, %v2499_v39 }
  0xdd   :  { %1877 = vmatprep.subr.bf16.mxu0 %v2007_v13  ;;  %1967 = vmatpush3.bf16.msra.mxu1 %v2007_v13 }
  0xde   :  { %v330_v5 = vpop.permute.xlu1 %329  ;;  %v2534_v51 = vpop.permute.xlu0 %338  ;;  %1878 = vmatpush3.bf16.msra.mxu0 %v2007_v13  ;;  %1964 = vmatprep.subr.bf16.mxu1 %v2008_v53 }
  0xdf   :  { %vm354_vm10 = vcmp.eq.s32.totalorder %v330_v5, %v2499_v39  ;;  %809 = vperm.xlu1 %1997, %v2286_v12   ;;  %v359_v12 = vsel %vm343_vm8, 1, %v2148_v3  ;;  %1879 = vmatprep.subr.bf16.mxu0 %v2008_v53  ;;  %v282_v5 = vadd.s32 %v266_v57, %v186_v24  ;;  %vm175_vm8 = vcmp.eq.s32.totalorder %v2396_v32, %v2499_v39 }
  0xe0   :  { %v370_v63 = vsel %vm354_vm10, 1, %v2148_v3  ;;  %785 = vperm.xlu0 %2003, %v2238_v4   ;;  %v196_v4 = vsel %vm180_vm7, 1, %v2148_v3  ;;  %v375_v13 = vadd.s32 %v359_v12, %v279_v30  ;;  %v272_v12 = vsel %vm256_vm0, 1, %v2148_v3 }
  0xe1   :  { %v2560_v1 = vadd.s32 %v370_v63, %v290_v54  ;;  %v292_v35 = vadd.s32 %v276_v25, %v196_v4  ;;  %1968 = vmatpush3.bf16.msra.mxu1 %v2008_v53  ;;  %v360_v4 = vsel %vm344_vm3, 1, %v2148_v3  ;;  %vm171_vm7 = vcmp.eq.s32.totalorder %v2383_v27, %v2499_v39 }
  0xe2   :  { %v336_v54 = vpop.permute.xlu1 %335  ;;  %1880 = vmatpush3.bf16.msra.mxu0 %v2008_v53  ;;  %v288_v57 = vadd.s32 %v272_v12, %v192_v61  ;;  %vm255_vm10 = vcmp.eq.s32.totalorder %v2444_v48, %v2499_v39  ;;  %v376_v10 = vadd.s32 %v360_v4, %v280_v31  ;;  %v187_v56 = vsel %vm171_vm7, 1, %v2148_v3 }
  0xe3   :  { %vm356_vm1 = vcmp.eq.s32.totalorder %v336_v54, %v2499_v39  ;;  %1998 = vset.pattern.permute.xlu1 %v2152_v21  ;;  %v393_v37 = vpop.permute.xlu0 %392  ;;  %v362_v21 = vsel %vm346_vm15, 1, %v2148_v3  ;;  %v271_v2 = vsel %vm255_vm10, 1, %v2148_v3  ;;  %vm177_vm15 = vcmp.eq.s32.totalorder %v2402_v34, %v2499_v39 }
  0xe4   :  { %v372_v33 = vsel %vm356_vm1, 1, %v2148_v3  ;;  %vm439_vm2 = vcmp.eq.s32.totalorder %v393_v37, %v2499_v39  ;;  %503 = vperm.xlu1 %1998, %v2248_v6   ;;  %791 = vperm.xlu0 %2003, %v2248_v6   ;;  %v378_v53 = vadd.s32 %v362_v21, %v282_v5  ;;  %v384_v41 = vadd.s32 %v368_v49, %v288_v57 }
  0xe5   :  { %v2597_v43 = vadd.s32 %v372_v33, %v292_v35  ;;  %v455_v30 = vsel %vm439_vm2, 1, %v2148_v3  ;;  %v191_v5 = vsel %vm175_vm8, 1, %v2148_v3  ;;  %vm257_vm0 = vcmp.eq.s32.totalorder %v2451_v50, %v2499_v39 }
  0xe6   :  { %v2606_v25 = vadd.s32 %v455_v30, %v375_v13  ;;  %v342_v63 = vpop.permute.xlu1 %341  ;;  %v363_v27 = vsel %vm347_vm13, 1, %v2148_v3  ;;  %v367_v32 = vsel %vm351_vm14, 1, %v2148_v3  ;;  %v283_v48 = vadd.s32 %v267_v60, %v187_v56 }
  0xe7   :  { %vm358_vm5 = vcmp.eq.s32.totalorder %v342_v63, %v2499_v39  ;;  %v402_v24 = vpop.permute.xlu0 %401  ;;  %v287_v12 = vadd.s32 %v271_v2, %v191_v5  ;;  %vm353_vm2 = vcmp.eq.s32.totalorder %v2497_v20, %v2499_v39  ;;  %vm173_vm3 = vcmp.eq.s32.totalorder %v2389_v29, %v2499_v39 }
  0xe8   :  { %v374_v54 = vsel %vm358_vm5, 1, %v2148_v3  ;;  %vm442_vm6 = vcmp.eq.s32.totalorder %v402_v24, %v2499_v39  ;;  %524 = vperm.xlu1 %1998, %v2303_v15   ;;  %794 = vperm.xlu0 %2003, %v2267_v9   ;;  %v193_v50 = vsel %vm177_vm15, 1, %v2148_v3  ;;  %v3282_v20 = vmov 5  }
  0xe9   :  { %v2629_v23 = vadd.s32 %v374_v54, %v294_v40  ;;  %v458_v58 = vsel %vm442_vm6, 1, %v2148_v3  ;;  %v273_v40 = vsel %vm257_vm0, 1, %v2148_v3  ;;  %v383_v54 = vadd.s32 %v367_v32, %v287_v12 }
  0xea   :  { %v2634_v35 = vadd.s32 %v458_v58, %v378_v53  ;;  %v379_v53 = vadd.s32 %v363_v27, %v283_v48  ;;  %v289_v58 = vadd.s32 %v273_v40, %v193_v50  ;;  %vm349_vm7 = vcmp.eq.s32.totalorder %v2484_v62, %v2499_v39 }
  0xeb   :  { %v396_v18 = vpop.permute.xlu1 %395  ;;  %v420_v37 = vpop.permute.xlu0 %419  ;;  %v365_v62 = vsel %vm349_vm7, 1, %v2148_v3  ;;  %vm169_vm14 = vcmp.eq.s32.totalorder %v2368_v22, %v2499_v39  ;;  %vm345_vm15 = vcmp.eq.s32.totalorder %v2475_v59, %v2499_v39 }
  0xec   :  { %vm440_vm11 = vcmp.eq.s32.totalorder %v396_v18, %v2499_v39  ;;  %vm448_vm12 = vcmp.eq.s32.totalorder %v420_v37, %v2499_v39  ;;  %506 = vperm.xlu1 %1998, %v2267_v9   ;;  %818 = vperm.xlu0 %2003, %v2315_v17   ;;  %v189_v18 = vsel %vm173_vm3, 1, %v2148_v3  ;;  %v269_v37 = vsel %vm253_vm4, 1, %v2148_v3 }
  0xed   :  { %v456_v13 = vsel %vm440_vm11, 1, %v2148_v3  ;;  %v464_v33 = vsel %vm448_vm12, 1, %v2148_v3  ;;  %v285_v29 = vadd.s32 %v269_v37, %v189_v18  ;;  %vm249_vm12 = vcmp.eq.s32.totalorder %v2426_v42, %v2499_v39 }
  0xee   :  { %v2652_v21 = vadd.s32 %v456_v13, %v376_v10  ;;  %v2654_v30 = vadd.s32 %v464_v33, %v384_v41  ;;  %v265_v42 = vsel %vm249_vm12, 1, %v2148_v3  ;;  %vm348_vm12 = vcmp.eq.s32.totalorder %v2488_v0, %v2499_v39 }
  0xef   :  { %v2672_v63 = vpop.permute.xlu1 %398  ;;  %v426_v61 = vpop.permute.xlu0 %425 }
  0xf0   :  { %vm450_vm1 = vcmp.eq.s32.totalorder %v426_v61, %v2499_v39  ;;  %530 = vperm.xlu1 %1998, %v2315_v17   ;;  %v381_v61 = vadd.s32 %v365_v62, %v285_v29  ;;  %vm441_vm0 = vcmp.eq.s32.totalorder %v2672_v63, %v2499_v39 }
  0xf1   :  { %v466_v44 = vsel %vm450_vm1, 1, %v2148_v3  ;;  %v457_v59 = vsel %vm441_vm0, 1, %v2148_v3 }
  0xf2   :  { %v2686_v34 = vadd.s32 %v466_v44, %v2560_v1  ;;  %v369_v1 = vsel %vm353_vm2, 1, %v2148_v3 }
  0xf3   :  { %v417_v24 = vpop.permute.xlu1 %416  ;;  %v405_v4 = vpop.permute.xlu0 %404  ;;  %v385_v33 = vadd.s32 %v369_v1, %v289_v58  ;;  %v3283_v58 = vmov 6  }
  0xf4   :  { %vm447_vm5 = vcmp.eq.s32.totalorder %v417_v24, %v2499_v39  ;;  %vm443_vm6 = vcmp.eq.s32.totalorder %v405_v4, %v2499_v39  ;;  %2000 = vset.pattern.permute.xlu1 %v3282_v20  ;;  %v185_v24 = vsel %vm169_vm14, 1, %v2148_v3  ;;  %v361_v4 = vsel %vm345_vm15, 1, %v2148_v3 }
  0xf5   :  { %v463_v31 = vsel %vm447_vm5, 1, %v2148_v3  ;;  %v459_v49 = vsel %vm443_vm6, 1, %v2148_v3  ;;  %596 = vperm.xlu1 %2000, %v2253_v7   ;;  %vm259_vm14 = vcmp.eq.s32.totalorder %v2455_v52, %v2499_v39  ;;  %vm355_vm15 = vcmp.eq.s32.totalorder %v2511_v11, %v2499_v39 }
  0xf6   :  { %v2703_v57 = vadd.s32 %v463_v31, %v383_v54  ;;  %v2705_v10 = vadd.s32 %v459_v49, %v379_v53  ;;  %v281_v54 = vadd.s32 %v265_v42, %v185_v24 }
  0xf7   :  { %v423_v41 = vpop.permute.xlu1 %422  ;;  %v432_v13 = vpop.permute.xlu0 %431 }
  0xf8   :  { %vm449_vm8 = vcmp.eq.s32.totalorder %v423_v41, %v2499_v39  ;;  %vm452_vm9 = vcmp.eq.s32.totalorder %v432_v13, %v2499_v39 }
  0xf9   :  { %v465_v56 = vsel %vm449_vm8, 1, %v2148_v3  ;;  %v468_v5 = vsel %vm452_vm9, 1, %v2148_v3  ;;  %620 = vperm.xlu1 %2000, %v2303_v15  }
  0xfa   :  { %v481_v60 = vadd.s32 %v465_v56, %v385_v33  ;;  %v2722_v46 = vadd.s32 %v468_v5, %v2597_v43 }
  0xfb   :  { %v411_v2 = vpop.permute.xlu0 %410 }
  0xfc   :  { %vm445_vm10 = vcmp.eq.s32.totalorder %v411_v2, %v2499_v39  ;;  %v489_v27 = vpop.permute.xlu1 %488 }
  0xfd   :  { %v461_v32 = vsel %vm445_vm10, 1, %v2148_v3  ;;  %vm535_vm11 = vcmp.eq.s32.totalorder %v489_v27, %v2499_v39  ;;  %623 = vperm.xlu1 %2000, %v2298_v14   ;;  %vm252_vm10 = vcmp.eq.s32.totalorder %v2434_v45, %v2499_v39  ;;  %v364_v45 = vsel %vm348_vm12, 1, %v2148_v3 }
  0xfe   :  { %v2728_v44 = vadd.s32 %v461_v32, %v381_v61  ;;  %v551_v48 = vsel %vm535_vm11, 1, %v2148_v3  ;;  %vm172_vm11 = vcmp.eq.s32.totalorder %v2381_v26, %v2499_v39  ;;  %vm350_vm12 = vcmp.eq.s32.totalorder %v2495_v19, %v2499_v39 }
  0xff   :  { %v2734_v43 = vadd.s32 %v551_v48, %v2606_v25  ;;  %v438_v12 = vpop.permute.xlu0 %437 }
 0x100   :  { %vm454_vm13 = vcmp.eq.s32.totalorder %v438_v12, %v2499_v39  ;;  %v2737_v50 = vpop.permute.xlu1 %512 }
 0x101   :  { %v470_v40 = vsel %vm454_vm13, 1, %v2148_v3  ;;  %605 = vperm.xlu1 %2000, %v2262_v8   ;;  %vm179_vm13 = vcmp.eq.s32.totalorder %v2408_v36, %v2499_v39  ;;  %v371_v36 = vsel %vm355_vm15, 1, %v2148_v3  ;;  %vm357_vm15 = vcmp.eq.s32.totalorder %v2534_v51, %v2499_v39 }
 0x102   :  { %v486_v25 = vadd.s32 %v470_v40, %v2629_v23  ;;  %v377_v23 = vadd.s32 %v361_v4, %v281_v54  ;;  %v3284_v40 = vmov 7   ;;  %v195_v0 = vsel %vm179_vm13, 1, %v2148_v3 }
 0x103   :  { %vm261_vm13 = vcmp.eq.s32.totalorder %v2462_v55, %v2499_v39 }
 0x104   :  { %v2751_v53 = vpop.permute.xlu1 %515  ;;  %v492_v22 = vpop.permute.xlu0 %491  ;;  %v473_v49 = vadd.s32 %v457_v59, %v377_v23  ;;  %v277_v55 = vsel %vm261_vm13, 1, %v2148_v3 }
 0x105   :  { %vm536_vm1 = vcmp.eq.s32.totalorder %v492_v22, %v2499_v39  ;;  %629 = vperm.xlu1 %2000, %v2310_v16  }
 0x106   :  { %v552_v20 = vsel %vm536_vm1, 1, %v2148_v3 }
 0x107   :  { %v568_v1 = vadd.s32 %v552_v20, %v2652_v21 }
 0x108   :  { %v498_v63 = vpop.permute.xlu1 %497  ;;  %v495_v31 = vpop.permute.xlu0 %494 }
 0x109   :  { %vm538_vm2 = vcmp.eq.s32.totalorder %v498_v63, %v2499_v39  ;;  %vm537_vm3 = vcmp.eq.s32.totalorder %v495_v31, %v2499_v39  ;;  %2002 = vset.pattern.permute.xlu1 %v3283_v58  ;;  %v275_v63 = vsel %vm259_vm14, 1, %v2148_v3 }
 0x10a   :  { %v554_v18 = vsel %vm538_vm2, 1, %v2148_v3  ;;  %v553_v37 = vsel %vm537_vm3, 1, %v2148_v3  ;;  %695 = vperm.xlu1 %2002, %v2248_v6   ;;  %vm543_vm2 = vcmp.eq.s32.totalorder %v2737_v50, %v2499_v39  ;;  %vm544_vm3 = vcmp.eq.s32.totalorder %v2751_v53, %v2499_v39 }
 0x10b   :  { %v2765_v41 = vadd.s32 %v554_v18, %v2634_v35  ;;  %v2767_v13 = vadd.s32 %v553_v37, %v473_v49  ;;  %v291_v18 = vadd.s32 %v275_v63, %v195_v0  ;;  %v560_v50 = vsel %vm544_vm3, 1, %v2148_v3 }
 0x10c   :  { %v522_v21 = vpop.permute.xlu1 %521  ;;  %v519_v33 = vpop.permute.xlu0 %518 }
 0x10d   :  { %vm546_vm4 = vcmp.eq.s32.totalorder %v522_v21, %v2499_v39  ;;  %vm545_vm5 = vcmp.eq.s32.totalorder %v519_v33, %v2499_v39  ;;  %v387_v33 = vadd.s32 %v371_v36, %v291_v18  ;;  %v373_v18 = vsel %vm357_vm15, 1, %v2148_v3 }
 0x10e   :  { %v562_v62 = vsel %vm546_vm4, 1, %v2148_v3  ;;  %v561_v56 = vsel %vm545_vm5, 1, %v2148_v3  ;;  %716 = vperm.xlu1 %2002, %v2303_v15  }
 0x10f   :  { %v2775_v5 = vadd.s32 %v562_v62, %v2686_v34  ;;  %v2777_v6 = vadd.s32 %v561_v56, %v481_v60 }
 0x110   :  { %v501_v35 = vpop.permute.xlu0 %500 }
 0x111   :  { %vm539_vm6 = vcmp.eq.s32.totalorder %v501_v35, %v2499_v39  ;;  %v588_v29 = vpop.permute.xlu1 %587  ;;  %v559_v35 = vsel %vm543_vm2, 1, %v2148_v3 }
 0x112   :  { %v555_v2 = vsel %vm539_vm6, 1, %v2148_v3  ;;  %vm632_vm7 = vcmp.eq.s32.totalorder %v588_v29, %v2499_v39  ;;  %698 = vperm.xlu1 %2002, %v2267_v9  }
 0x113   :  { %v2784_v61 = vadd.s32 %v555_v2, %v2705_v10  ;;  %v648_v27 = vsel %vm632_vm7, 1, %v2148_v3 }
 0x114   :  { %v2787_v32 = vadd.s32 %v648_v27, %v568_v1  ;;  %v528_v34 = vpop.permute.xlu0 %527 }
 0x115   :  { %vm548_vm8 = vcmp.eq.s32.totalorder %v528_v34, %v2499_v39  ;;  %v2790_v60 = vpop.permute.xlu1 %608  ;;  %v575_v34 = vadd.s32 %v559_v35, %v2703_v57 }
 0x116   :  { %v564_v48 = vsel %vm548_vm8, 1, %v2148_v3  ;;  %722 = vperm.xlu1 %2002, %v2315_v17   ;;  %vm639_vm4 = vcmp.eq.s32.totalorder %v2790_v60, %v2499_v39  ;;  %vm254_vm8 = vcmp.eq.s32.totalorder %v2440_v47, %v2499_v39 }
 0x117   :  { %v2795_v12 = vadd.s32 %v564_v48, %v2722_v46  ;;  %v655_v2 = vsel %vm639_vm4, 1, %v2148_v3  ;;  %v270_v47 = vsel %vm254_vm8, 1, %v2148_v3 }
 0x118   :  { %v2797_v9 = vpop.permute.xlu0 %509 }
 0x119   :  { %v2799_v10 = vpop.permute.xlu1 %590 }
 0x11a   :  { %2004 = vset.pattern.permute.xlu1 %v3284_v40  ;;  %v576_v40 = vadd.s32 %v560_v50, %v2654_v30  ;;  %vm633_vm4 = vcmp.eq.s32.totalorder %v2799_v10, %v2499_v39 }
 0x11b   :  { %788 = vperm.xlu1 %2004, %v2253_v7  }
 0x11c   :  { %v534_v42 = vpop.permute.xlu0 %533 }
 0x11d   :  { %vm550_vm9 = vcmp.eq.s32.totalorder %v534_v42, %v2499_v39  ;;  %v2804_v24 = vpop.permute.xlu1 %614  ;;  %v671_v42 = vadd.s32 %v655_v2, %v575_v34 }
 0x11e   :  { %v566_v4 = vsel %vm550_vm9, 1, %v2148_v3 }
 0x11f   :  { %v2807_v22 = vadd.s32 %v566_v4, %v486_v25  ;;  %812 = vperm.xlu1 %2004, %v2303_v15  }
 0x121   :  { %v2810_v17 = vpop.permute.xlu0 %584 }
 0x122   :  { %v2812_v46 = vpop.permute.xlu1 %680  ;;  %vm631_vm3 = vcmp.eq.s32.totalorder %v2810_v17, %v2499_v39 }
 0x123   :  { %815 = vperm.xlu1 %2004, %v2298_v14   ;;  %v268_v14 = vsel %vm252_vm10, 1, %v2148_v3  ;;  %vm174_vm10 = vcmp.eq.s32.totalorder %v2387_v28, %v2499_v39 }
 0x124   :  { %v190_v28 = vsel %vm174_vm10, 1, %v2148_v3 }
 0x125   :  { %v612_v54 = vpop.permute.xlu0 %611  ;;  %v286_v63 = vadd.s32 %v270_v47, %v190_v28 }
 0x126   :  { %v705_v59 = vpop.permute.xlu1 %704  ;;  %vm640_vm5 = vcmp.eq.s32.totalorder %v612_v54, %v2499_v39 }
 0x127   :  { %797 = vperm.xlu1 %2004, %v2262_v8   ;;  %vm735_vm6 = vcmp.eq.s32.totalorder %v705_v59, %v2499_v39  ;;  %v656_v53 = vsel %vm640_vm5, 1, %v2148_v3 }
 0x128   :  { %v751_v60 = vsel %vm735_vm6, 1, %v2148_v3  ;;  %v672_v59 = vadd.s32 %v656_v53, %v576_v40  ;;  %vm641_vm6 = vcmp.eq.s32.totalorder %v2804_v24, %v2499_v39 }
 0x129   :  { %v2816_v7 = vpop.permute.xlu0 %593 }
 0x12a   :  { %v708_v20 = vpop.permute.xlu1 %707  ;;  %vm634_vm8 = vcmp.eq.s32.totalorder %v2816_v7, %v2499_v39 }
 0x12b   :  { %821 = vperm.xlu1 %2004, %v2310_v16   ;;  %v188_v16 = vsel %vm172_vm11, 1, %v2148_v3  ;;  %vm736_vm7 = vcmp.eq.s32.totalorder %v708_v20, %v2499_v39  ;;  %v767_v20 = vadd.s32 %v751_v60, %v671_v42  ;;  %vm181_vm11 = vcmp.eq.s32.totalorder %v2414_v38, %v2499_v39 }
 0x12c   :  { %v284_v26 = vadd.s32 %v268_v14, %v188_v16  ;;  %v752_v4 = vsel %vm736_vm7, 1, %v2148_v3  ;;  %v366_v38 = vsel %vm350_vm12, 1, %v2148_v3  ;;  %v197_v0 = vsel %vm181_vm11, 1, %v2148_v3 }
 0x12d   :  { %v2819_v23 = vpop.permute.xlu0 %617  ;;  %v768_v14 = vadd.s32 %v752_v4, %v672_v59  ;;  %v293_v51 = vadd.s32 %v277_v55, %v197_v0  ;;  %vm727_vm7 = vcmp.eq.s32.totalorder %v2812_v46, %v2499_v39  ;;  %v657_v42 = vsel %vm641_vm6, 1, %v2148_v3 }
 0x12e   :  { %v2821_v25 = vpop.permute.xlu1 %689  ;;  %v380_v49 = vadd.s32 %v364_v45, %v284_v26  ;;  %v743_v24 = vsel %vm727_vm7, 1, %v2148_v3  ;;  %v650_v7 = vsel %vm634_vm8, 1, %v2148_v3  ;;  %vm642_vm11 = vcmp.eq.s32.totalorder %v2819_v23, %v2499_v39 }
 0x12f   :  { %v389_v50 = vadd.s32 %v373_v18, %v293_v51  ;;  %vm730_vm13 = vcmp.eq.s32.totalorder %v2821_v25, %v2499_v39 }
 0x131   :  { %v2825_v15 = vpop.permute.xlu0 %599 }
 0x132   :  { %v2831_v8 = vpop.permute.xlu1 %713  ;;  %vm636_vm6 = vcmp.eq.s32.totalorder %v2825_v15, %v2499_v39 }
 0x133   :  { %vm738_vm15 = vcmp.eq.s32.totalorder %v2831_v8, %v2499_v39 }
 0x134   :  { %v754_v8 = vsel %vm738_vm15, 1, %v2148_v3 }
 0x135   :  { %v2840_v1 = vpop.permute.xlu0 %602 }
 0x136   :  { %vm637_vm8 = vcmp.eq.s32.totalorder %v2840_v1, %v2499_v39 }
 0x137   :  { %v408_v31 = vpop.permute.xlu1 %407 }
 0x138   :  { %vm444_vm0 = vcmp.eq.s32.totalorder %v408_v31, %v2499_v39 }
 0x139   :  { %v460_v52 = vsel %vm444_vm0, 1, %v2148_v3  ;;  %v2849_v58 = vpop.permute.xlu0 %626  ;;  %vm943_vm0 = vcmask 523264  }
 0x13a   :  { %v2851_v37 = vadd.s32 %v460_v52, %v380_v49  ;;  %v382_v52 = vadd.s32 %v366_v38, %v286_v63 }
 0x13b   :  { %v429_v21 = vpop.permute.xlu1 %428 }
 0x13c   :  { %vm451_vm1 = vcmp.eq.s32.totalorder %v429_v21, %v2499_v39 }
 0x13d   :  { %v467_v11 = vsel %vm451_vm1, 1, %v2148_v3  ;;  %vm542_vm1 = vcmp.eq.s32.totalorder %v2797_v9, %v2499_v39  ;;  %v647_v9 = vsel %vm631_vm3, 1, %v2148_v3 }
 0x13e   :  { %v2857_v62 = vadd.s32 %v467_v11, %v387_v33  ;;  %v2859_v56 = vpop.permute.xlu0 %683  ;;  %v558_v2 = vsel %vm542_vm1, 1, %v2148_v3  ;;  %v663_v40 = vadd.s32 %v647_v9, %v2734_v43 }
 0x13f   :  { %vm728_vm10 = vcmp.eq.s32.totalorder %v2859_v56, %v2499_v39  ;;  %v673_v56 = vadd.s32 %v657_v42, %v2777_v6 }
 0x140   :  { %v2866_v29 = vpop.permute.xlu1 %776  ;;  %v744_v23 = vsel %vm728_vm10, 1, %v2148_v3  ;;  %vm645_vm10 = vcmp.eq.s32.totalorder %v2849_v58, %v2499_v39 }
 0x142   :  { %v2872_v27 = vpop.permute.xlu0 %686 }
 0x144   :  { %v801_v48 = vpop.permute.xlu1 %800 }
 0x145   :  { %vm831_vm9 = vcmp.eq.s32.totalorder %v801_v48, %v2499_v39  ;;  %v649_v48 = vsel %vm633_vm4, 1, %v2148_v3 }
 0x146   :  { %v847_v54 = vsel %vm831_vm9, 1, %v2148_v3  ;;  %v2884_v57 = vpop.permute.xlu0 %710  ;;  %vm823_vm9 = vcmp.eq.s32.totalorder %v2866_v29, %v2499_v39  ;;  %v665_v43 = vadd.s32 %v649_v48, %v2767_v13  ;;  %v658_v13 = vsel %vm642_vm11, 1, %v2148_v3 }
 0x147   :  { %v863_v16 = vadd.s32 %v847_v54, %v767_v20  ;;  %vm737_vm12 = vcmp.eq.s32.totalorder %v2884_v57, %v2499_v39  ;;  %v839_v29 = vsel %vm823_vm9, 1, %v2148_v3  ;;  %v759_v54 = vadd.s32 %v743_v24, %v663_v40 }
 0x148   :  { %v804_v30 = vpop.permute.xlu1 %803  ;;  %v666_v57 = vadd.s32 %v650_v7, %v2765_v41  ;;  %v753_v59 = vsel %vm737_vm12, 1, %v2148_v3  ;;  %v746_v20 = vsel %vm730_vm13, 1, %v2148_v3  ;;  %v652_v24 = vsel %vm636_vm6, 1, %v2148_v3 }
 0x149   :  { %vm832_vm14 = vcmp.eq.s32.totalorder %v804_v30, %v2499_v39  ;;  %v895_v31 = vcvt.s32.f32 %v863_v16  ;;  %v760_v30 = vadd.s32 %v744_v23, %v2787_v32  ;;  %v769_v16 = vadd.s32 %v753_v59, %v673_v56 }
 0x14a   :  { %v848_v45 = vsel %vm832_vm14, 1, %v2148_v3  ;;  %v2897_v26 = vpop.permute.xlu0 %692  ;;  %vm729_vm14 = vcmp.eq.s32.totalorder %v2872_v27, %v2499_v39  ;;  %v855_v27 = vadd.s32 %v839_v29, %v759_v54  ;;  %v762_v38 = vadd.s32 %v746_v20, %v666_v57 }
 0x14b   :  { %v864_v19 = vadd.s32 %v848_v45, %v768_v14  ;;  %v745_v6 = vsel %vm729_vm14, 1, %v2148_v3  ;;  %v674_v14 = vadd.s32 %v658_v13, %v2775_v5  ;;  %v661_v57 = vsel %vm645_vm10, 1, %v2148_v3 }
 0x14c   :  { %vm731_vm12 = vcmp.eq.s32.totalorder %v2897_v26, %v2499_v39 }
 0x14d   :  { %v896_v49 = vcvt.s32.f32 %v864_v19  ;;  %v414_v36 = vpop.permute.xlu1 %413  ;;  %v761_v19 = vadd.s32 %v745_v6, %v665_v43  ;;  %v770_v55 = vadd.s32 %v754_v8, %v674_v14  ;;  %v747_v58 = vsel %vm731_vm12, 1, %v2148_v3 }
 0x14e   :  { %vm446_vm2 = vcmp.eq.s32.totalorder %v414_v36, %v2499_v39  ;;  %v2909_v21 = vpop.permute.xlu0 %719 }
 0x14f   :  { %v462_v33 = vsel %vm446_vm2, 1, %v2148_v3  ;;  %v907_v11 = vpack.c.bf16 %v896_v49, %v895_v31  ;;  %v887_v31 = vcvt.s32.f32 %v855_v27  ;;  %vm740_vm14 = vcmp.eq.s32.totalorder %v2909_v21, %v2499_v39 }
 0x150   :  { %v478_v35 = vadd.s32 %v462_v33, %v382_v52  ;;  %v756_v26 = vsel %vm740_vm14, 1, %v2148_v3 }
 0x151   :  { %v435_v34 = vpop.permute.xlu1 %434  ;;  %1889 = vmatprep.mubr.msk.bf16.mxu1 %vm943_vm0, %v907_v11 }
 0x152   :  { %vm453_vm5 = vcmp.eq.s32.totalorder %v435_v34, %v2499_v39  ;;  %v2920_v53 = vpop.permute.xlu0 %701  ;;  %v2922_v17 = vadd.s32 %v558_v2, %v478_v35 }
 0x153   :  { %v469_v60 = vsel %vm453_vm5, 1, %v2148_v3 }
 0x154   :  { %v2931_v10 = vadd.s32 %v469_v60, %v389_v50 }
 0x156   :  { %v783_v46 = vpop.permute.xlu1 %782  ;;  %v2941_v4 = vpop.permute.xlu0 %725 }
 0x157   :  { %vm825_vm1 = vcmp.eq.s32.totalorder %v783_v46, %v2499_v39 }
 0x158   :  { %v841_v45 = vsel %vm825_vm1, 1, %v2148_v3  ;;  %vm734_vm1 = vcmp.eq.s32.totalorder %v2920_v53, %v2499_v39 }
 0x159   :  { %v857_v36 = vadd.s32 %v841_v45, %v761_v19 }
 0x15a   :  { %v807_v25 = vpop.permute.xlu1 %806 }
 0x15b   :  { %vm833_vm2 = vcmp.eq.s32.totalorder %v807_v25, %v2499_v39  ;;  %v780_v47 = vpop.permute.xlu0 %779  ;;  %v889_v34 = vcvt.s32.f32 %v857_v36 }
 0x15c   :  { %v849_v41 = vsel %vm833_vm2, 1, %v2148_v3  ;;  %vm824_vm3 = vcmp.eq.s32.totalorder %v780_v47, %v2499_v39 }
 0x15d   :  { %v840_v28 = vsel %vm824_vm3, 1, %v2148_v3  ;;  %v865_v49 = vadd.s32 %v849_v41, %v769_v16  ;;  %v750_v41 = vsel %vm734_vm1, 1, %v2148_v3  ;;  %vm742_vm3 = vcmp.eq.s32.totalorder %v2941_v4, %v2499_v39 }
 0x15e   :  { %v856_v0 = vadd.s32 %v840_v28, %v760_v30  ;;  %v810_v63 = vpop.permute.xlu1 %809  ;;  %v758_v45 = vsel %vm742_vm3, 1, %v2148_v3 }
 0x15f   :  { %vm834_vm4 = vcmp.eq.s32.totalorder %v810_v63, %v2499_v39  ;;  %v786_v32 = vpop.permute.xlu0 %785  ;;  %v897_v35 = vcvt.s32.f32 %v865_v49 }
 0x160   :  { %v888_v52 = vcvt.s32.f32 %v856_v0  ;;  %v850_v18 = vsel %vm834_vm4, 1, %v2148_v3  ;;  %vm826_vm5 = vcmp.eq.s32.totalorder %v786_v32, %v2499_v39 }
 0x161   :  { %v866_v5 = vadd.s32 %v850_v18, %v770_v55  ;;  %v842_v51 = vsel %vm826_vm5, 1, %v2148_v3 }
 0x162   :  { %v858_v33 = vadd.s32 %v842_v51, %v762_v38  ;;  %v903_v11 = vpack.c.bf16 %v888_v52, %v887_v31 }
 0x163   :  { %v898_v50 = vcvt.s32.f32 %v866_v5  ;;  %v504_v2 = vpop.permute.xlu1 %503  ;;  %v792_v0 = vpop.permute.xlu0 %791 }
 0x164   :  { %v890_v9 = vcvt.s32.f32 %v858_v33  ;;  %vm540_vm7 = vcmp.eq.s32.totalorder %v504_v2, %v2499_v39  ;;  %1881 = vmatprep.mubr.msk.bf16.mxu0 %vm943_vm0, %v903_v11  ;;  %vm828_vm6 = vcmp.eq.s32.totalorder %v792_v0, %v2499_v39  ;;  %v872_v0 = vld [vmem:[#allocation2 + $0x8] sm:$0xff] }
 0x165   :  { %v908_v60 = vpack.c.bf16 %v898_v50, %v897_v35  ;;  %v556_v48 = vsel %vm540_vm7, 1, %v2148_v3 }
 0x166   :  { %v904_v40 = vpack.c.bf16 %v890_v9, %v889_v34  ;;  %v572_v42 = vadd.s32 %v556_v48, %v2851_v37  ;;  %v653_v37 = vsel %vm637_vm8, 1, %v2148_v3 }
 0x167   :  { %v525_v46 = vpop.permute.xlu1 %524  ;;  %1890 = vmatmul.mubr.msk.bf16.vlgmr.msra.gmra.mrb[0].mxu1 %vm943_vm0, %v908_v60  ;;  %v795_v18 = vpop.permute.xlu0 %794 }
 0x168   :  { %1882 = vmatmul.mubr.msk.bf16.vlgmr.msra.gmra.mrb[0].mxu0 %vm943_vm0, %v904_v40  ;;  %v668_v15 = vadd.s32 %v652_v24, %v572_v42  ;;  %vm547_vm7 = vcmp.eq.s32.totalorder %v525_v46, %v2499_v39 }
 0x169   :  { %v563_v31 = vsel %vm547_vm7, 1, %v2148_v3 }
 0x16a   :  { %v579_v52 = vadd.s32 %v563_v31, %v2857_v62 }
 0x16b   :  { %v507_v7 = vpop.permute.xlu1 %506  ;;  %v819_v40 = vpop.permute.xlu0 %818 }
 0x16c   :  { %vm541_vm9 = vcmp.eq.s32.totalorder %v507_v7, %v2499_v39  ;;  %vm837_vm1 = vcmp.eq.s32.totalorder %v819_v40, %v2499_v39 }
 0x16d   :  { %v557_v43 = vsel %vm541_vm9, 1, %v2148_v3 }
 0x16e   :  { %v573_v29 = vadd.s32 %v557_v43, %v2728_v44 }
 0x16f   :  { %v531_v56 = vpop.permute.xlu1 %530 }
 0x170   :  { %vm549_vm11 = vcmp.eq.s32.totalorder %v531_v56, %v2499_v39  ;;  %v2994_v54 = vadd.s32 %v653_v37, %v573_v29 }
 0x171   :  { %v565_v23 = vsel %vm549_vm11, 1, %v2148_v3 }
 0x172   :  { %v581_v1 = vadd.s32 %v565_v23, %v2931_v10 }
 0x174   :  { %v597_v44 = vpop.permute.xlu1 %596  ;;  %v3001_v13 = vadd.s32 %v661_v57, %v581_v1  ;;  %v853_v1 = vsel %vm837_vm1, 1, %v2148_v3 }
 0x175   :  { %vm635_vm13 = vcmp.eq.s32.totalorder %v597_v44, %v2499_v39 }
 0x176   :  { %v651_v59 = vsel %vm635_vm13, 1, %v2148_v3  ;;  %vm829_vm13 = vcmp.eq.s32.totalorder %v795_v18, %v2499_v39  ;;  %v875_v18 = vld [vmem:[#allocation2 + $0x20] sm:$0xff] }
 0x177   :  { %v667_v25 = vadd.s32 %v651_v59, %v2784_v61  ;;  %v845_v24 = vsel %vm829_vm13, 1, %v2148_v3 }
 0x178   :  { %v621_v20 = vpop.permute.xlu1 %620 }
 0x179   :  { %v763_v27 = vadd.s32 %v747_v58, %v667_v25  ;;  %vm643_vm8 = vcmp.eq.s32.totalorder %v621_v20, %v2499_v39 }
 0x17a   :  { %v659_v32 = vsel %vm643_vm8, 1, %v2148_v3 }
 0x17b   :  { %v675_v33 = vadd.s32 %v659_v32, %v579_v52  ;;  %v877_v52 = vld [vmem:[#allocation2 + $0x30] sm:$0xff] }
 0x17c   :  { %v624_v10 = vpop.permute.xlu1 %623 }
 0x17d   :  { %vm644_vm15 = vcmp.eq.s32.totalorder %v624_v10, %v2499_v39 }
 0x17e   :  { %v660_v6 = vsel %vm644_vm15, 1, %v2148_v3 }
 0x17f   :  { %v676_v47 = vadd.s32 %v660_v6, %v2795_v12 }
 0x180   :  { %v606_v8 = vpop.permute.xlu1 %605 }
 0x181   :  { %vm638_vm2 = vcmp.eq.s32.totalorder %v606_v8, %v2499_v39  ;;  %v772_v61 = vadd.s32 %v756_v26, %v676_v47 }
 0x182   :  { %v654_v30 = vsel %vm638_vm2, 1, %v2148_v3 }
 0x183   :  { %v670_v21 = vadd.s32 %v654_v30, %v2922_v17  ;;  %v873_v30 = vld [vmem:[#allocation2 + $0x10] sm:$0xff] }
 0x184   :  { %v630_v14 = vpop.permute.xlu1 %629 }
 0x185   :  { %vm646_vm4 = vcmp.eq.s32.totalorder %v630_v14, %v2499_v39  ;;  %v766_v12 = vadd.s32 %v750_v41, %v670_v21  ;;  %v879_v21 = vld [vmem:[#allocation2 + $0x40] sm:$0xff] }
 0x186   :  { %v662_v16 = vsel %vm646_vm4, 1, %v2148_v3  ;;  %v871_v14 = vld [vmem:[#allocation2] sm:$0xff] }
 0x187   :  { %v678_v53 = vadd.s32 %v662_v16, %v2807_v22  ;;  %v844_v22 = vsel %vm828_vm6, 1, %v2148_v3 }
 0x189   :  { %v696_v28 = vpop.permute.xlu1 %695  ;;  %v3025_v38 = vadd.s32 %v758_v45, %v678_v53  ;;  %v880_v45 = vld [vmem:[#allocation2 + $0x48] sm:$0xff] }
 0x18a   :  { %vm732_vm5 = vcmp.eq.s32.totalorder %v696_v28, %v2499_v39 }
 0x18b   :  { %v748_v63 = vsel %vm732_vm5, 1, %v2148_v3 }
 0x18c   :  { %v764_v55 = vadd.s32 %v748_v63, %v668_v15 }
 0x18d   :  { %v717_v19 = vpop.permute.xlu1 %716 }
 0x18e   :  { %v860_v36 = vadd.s32 %v844_v22, %v764_v55  ;;  %vm739_vm9 = vcmp.eq.s32.totalorder %v717_v19, %v2499_v39 }
 0x18f   :  { %v755_v11 = vsel %vm739_vm9, 1, %v2148_v3 }
 0x190   :  { %v892_v50 = vcvt.s32.f32 %v860_v36  ;;  %v771_v9 = vadd.s32 %v755_v11, %v675_v33 }
 0x191   :  { %v699_v17 = vpop.permute.xlu1 %698 }
 0x192   :  { %vm733_vm11 = vcmp.eq.s32.totalorder %v699_v17, %v2499_v39 }
 0x193   :  { %v749_v2 = vsel %vm733_vm11, 1, %v2148_v3 }
 0x194   :  { %v765_v48 = vadd.s32 %v749_v2, %v2994_v54 }
 0x195   :  { %v723_v4 = vpop.permute.xlu1 %722 }
 0x196   :  { %vm741_vm14 = vcmp.eq.s32.totalorder %v723_v4, %v2499_v39  ;;  %v861_v29 = vadd.s32 %v845_v24, %v765_v48 }
 0x197   :  { %v757_v15 = vsel %vm741_vm14, 1, %v2148_v3 }
 0x198   :  { %v773_v56 = vadd.s32 %v757_v15, %v3001_v13  ;;  %v893_v25 = vcvt.s32.f32 %v861_v29  ;;  %v884_v15 = vld [vmem:[#allocation2 + $0x68] sm:$0xff] }
 0x19a   :  { %v789_v49 = vpop.permute.xlu1 %788  ;;  %v869_v20 = vadd.s32 %v853_v1, %v773_v56 }
 0x19b   :  { %vm827_vm10 = vcmp.eq.s32.totalorder %v789_v49, %v2499_v39 }
 0x19c   :  { %v843_v5 = vsel %vm827_vm10, 1, %v2148_v3  ;;  %v901_v6 = vcvt.s32.f32 %v869_v20 }
 0x19d   :  { %v859_v51 = vadd.s32 %v843_v5, %v763_v27 }
 0x19e   :  { %v813_v35 = vpop.permute.xlu1 %812 }
 0x19f   :  { %v891_v34 = vcvt.s32.f32 %v859_v51  ;;  %vm835_vm12 = vcmp.eq.s32.totalorder %v813_v35, %v2499_v39  ;;  %v878_v51 = vld [vmem:[#allocation2 + $0x38] sm:$0xff]  ;;  %v876_v35 = vld [vmem:[#allocation2 + $0x28] sm:$0xff] }
 0x1a0   :  { %v851_v62 = vsel %vm835_vm12, 1, %v2148_v3 }
 0x1a1   :  { %v905_v60 = vpack.c.bf16 %v892_v50, %v891_v34  ;;  %v867_v46 = vadd.s32 %v851_v62, %v771_v9  ;;  %v885_v34 = vld [vmem:[#allocation2 + $0x70] sm:$0xff] }
 0x1a2   :  { %v816_v42 = vpop.permute.xlu1 %815 }
 0x1a3   :  { %vm836_vm15 = vcmp.eq.s32.totalorder %v816_v42, %v2499_v39  ;;  %1885 = vmatprep.mubr.msk.bf16.mxu0 %vm943_vm0, %v905_v60  ;;  %v899_v54 = vcvt.s32.f32 %v867_v46  ;;  %v883_v60 = vld [vmem:[#allocation2 + $0x60] sm:$0xff]  ;;  %v886_v42 = vld [vmem:[#allocation2 + $0x78] sm:$0xff] }
 0x1a4   :  { %v852_v7 = vsel %vm836_vm15, 1, %v2148_v3 }
 0x1a5   :  { %v868_v43 = vadd.s32 %v852_v7, %v772_v61  ;;  %v881_v61 = vld [vmem:[#allocation2 + $0x50] sm:$0xff] }
 0x1a6   :  { %v798_v37 = vpop.permute.xlu1 %797 }
 0x1a7   :  { %v900_v23 = vcvt.s32.f32 %v868_v43  ;;  %vm830_vm2 = vcmp.eq.s32.totalorder %v798_v37, %v2499_v39 }
 0x1a8   :  { %v846_v57 = vsel %vm830_vm2, 1, %v2148_v3 }
 0x1a9   :  { %v909_v44 = vpack.c.bf16 %v900_v23, %v899_v54  ;;  %v862_v58 = vadd.s32 %v846_v57, %v766_v12 }
 0x1aa   :  { %v822_v59 = vpop.permute.xlu1 %821 }
 0x1ab   :  { %v894_v27 = vcvt.s32.f32 %v862_v58  ;;  %vm838_vm3 = vcmp.eq.s32.totalorder %v822_v59, %v2499_v39  ;;  %1893 = vmatprep.mubr.msk.bf16.mxu1 %vm943_vm0, %v909_v44  ;;  %v882_v39 = vld [vmem:[#allocation2 + $0x58] sm:$0xff] }
 0x1ac   :  { %v854_v13 = vsel %vm838_vm3, 1, %v2148_v3  ;;  %v874_v3 = vld [vmem:[#allocation2 + $0x18] sm:$0xff] }
 0x1ad   :  { %v906_v10 = vpack.c.bf16 %v894_v27, %v893_v25  ;;  %v870_v26 = vadd.s32 %v854_v13, %v3025_v38 }
 0x1af   :  { %v902_v47 = vcvt.s32.f32 %v870_v26  ;;  %1886 = vmatmul.mubr.msk.bf16.gmra.mrb[4].mxu0 %vm943_vm0, %v906_v10 }
 0x1b1   :  { %v910_v8 = vpack.c.bf16 %v902_v47, %v901_v6 }
 0x1b3   :  { %1894 = vmatmul.mubr.msk.bf16.gmra.mrb[4].mxu1 %vm943_vm0, %v910_v8 }
 0x23a   :  { %v1891_v41 = vpop.f32.mrb[0].mxu1 }
 0x23b   :  { %v1075_v12 = vadd.f32 %v1891_v41, %v881_v61  ;;  %v1883_v16 = vpop.f32.mrb[0].mxu0  ;;  %v1034_v53 = vpop.f32.mrb[1].mxu1 }
 0x23c   :  { %v1067_v28 = vadd.f32 %v1883_v16, %v873_v30  ;;  %v1073_v38 = vadd.f32 %v1034_v53, %v879_v21  ;;  %v1002_v19 = vpop.f32.mrb[1].mxu0  ;;  %v1892_v17 = vpop.f32.mrb[2].mxu1 }
 0x23d   :  { %1091 = vst [vmem:[#allocation2 + $0x50] sm:$0xff] %v1075_v12  ;;  %v1065_v63 = vadd.f32 %v1002_v19, %v871_v14  ;;  %v1076_v4 = vadd.f32 %v1892_v17, %v882_v39  ;;  %v1884_v55 = vpop.f32.mrb[2].mxu0  ;;  %v1037_v22 = vpop.f32.mrb[3].mxu1 }
 0x23e   :  { %1083 = vst [vmem:[#allocation2 + $0x10] sm:$0xff] %v1067_v28  ;;  %1089 = vst [vmem:[#allocation2 + $0x40] sm:$0xff] %v1073_v38  ;;  %v1068_v31 = vadd.f32 %v1884_v55, %v874_v3  ;;  %v1074_v49 = vadd.f32 %v1037_v22, %v880_v45  ;;  %v1005_v32 = vpop.f32.mrb[3].mxu0 }
 0x23f   :  { %1081 = vst [vmem:[#allocation2] sm:$0xff] %v1065_v63  ;;  %1092 = vst [vmem:[#allocation2 + $0x58] sm:$0xff] %v1076_v4  ;;  %v1066_v36 = vadd.f32 %v1005_v32, %v872_v0 }
 0x240   :  { %1084 = vst [vmem:[#allocation2 + $0x18] sm:$0xff] %v1068_v31  ;;  %1090 = vst [vmem:[#allocation2 + $0x48] sm:$0xff] %v1074_v49 }
 0x241   :  { %1082 = vst [vmem:[#allocation2 + $0x8] sm:$0xff] %v1066_v36 }
 0x282   :  { %v1887_v5 = vpop.f32.mrb[4].mxu0 }
 0x283   :  { %v1071_v33 = vadd.f32 %v1887_v5, %v877_v52  ;;  %v1018_v11 = vpop.f32.mrb[5].mxu0 }
 0x284   :  { %v1069_v50 = vadd.f32 %v1018_v11, %v875_v18  ;;  %v1888_v2 = vpop.f32.mrb[6].mxu0 }
 0x285   :  { %1087 = vst [vmem:[#allocation2 + $0x30] sm:$0xff] %v1071_v33  ;;  %v1072_v62 = vadd.f32 %v1888_v2, %v878_v51  ;;  %v1021_v9 = vpop.f32.mrb[7].mxu0 }
 0x286   :  { %1085 = vst [vmem:[#allocation2 + $0x20] sm:$0xff] %v1069_v50  ;;  %v1070_v48 = vadd.f32 %v1021_v9, %v876_v35  ;;  %v1895_v40 = vpop.f32.mrb[4].mxu1 }
 0x287   :  { %1088 = vst [vmem:[#allocation2 + $0x38] sm:$0xff] %v1072_v62  ;;  %v1079_v24 = vadd.f32 %v1895_v40, %v885_v34  ;;  %v1050_v46 = vpop.f32.mrb[5].mxu1 }
 0x288   :  { %1086 = vst [vmem:[#allocation2 + $0x28] sm:$0xff] %v1070_v48  ;;  %v1077_v7 = vadd.f32 %v1050_v46, %v883_v60  ;;  %v1896_v43 = vpop.f32.mrb[6].mxu1 }
 0x289   :  { %1095 = vst [vmem:[#allocation2 + $0x70] sm:$0xff] %v1079_v24  ;;  %v1080_v29 = vadd.f32 %v1896_v43, %v886_v42  ;;  %v1053_v37 = vpop.f32.mrb[7].mxu1 }
 0x28a   :  { %1093 = vst [vmem:[#allocation2 + $0x60] sm:$0xff] %v1077_v7  ;;  %v1078_v56 = vadd.f32 %v1053_v37, %v884_v15 }
 0x28b   :  { %1096 = vst [vmem:[#allocation2 + $0x78] sm:$0xff] %v1080_v29 }
 0x28c   :  { %1094 = vst [vmem:[#allocation2 + $0x68] sm:$0xff] %v1078_v56 }
 0x28d PF:  { %v1102_v54 = vld [vmem:[%s3272_s3 + $0x10] sm:$0xff]  ;;  %v1100_v23 = vld [vmem:[%s3272_s3] sm:$0xff]  ;;  %v1103_v1 = vld [vmem:[%s3272_s3 + $0x18] sm:$0xff]  ;;  %v2156_v57 = vmov 0  }
 0x28e   :  { %2010 = vset.pattern.permute.xlu1 %v2156_v57  ;;  %2009 = vset.pattern.permute.xlu0 %v2156_v57  ;;  %2027 = vrcp.f32 %v1102_v54  ;;  %v1101_v44 = vld [vmem:[%s3272_s3 + $0x8] sm:$0xff]  ;;  %v1104_v59 = vld [vmem:[%s3272_s3 + $0x20] sm:$0xff]  ;;  %v1107_v27 = vld [vmem:[%s3272_s3 + $0x38] sm:$0xff] }
 0x28f   :  { %2029 = vrcp.f32 %v1100_v23  ;;  %v1105_v58 = vld [vmem:[%s3272_s3 + $0x28] sm:$0xff]  ;;  %v2011_v25 = vld [vmem:[%s3274_s5] sm:$0xff]   ;;  %v1106_v13 = vld [vmem:[%s3272_s3 + $0x30] sm:$0xff] }
 0x290   :  { %2031 = vrcp.f32 %v1103_v1  ;;  %v2012_v20 = vld [vmem:[%s3274_s5 + $0x8] sm:$0xff]   ;;  %1897 = vmatprep.subr.bf16.mxu0 %v2011_v25  ;;  %v2013_v10 = vld [vmem:[%s3274_s5 + $0x10] sm:$0xff]   ;;  %v1108_v8 = vld [vmem:[%s3272_s3 + $0x40] sm:$0xff] }
 0x291   :  { %2033 = vrcp.f32 %v1101_v44  ;;  %1898 = vmatpush3.bf16.msra.mxu0 %v2011_v25  ;;  %v1109_v47 = vld [vmem:[%s3272_s3 + $0x48] sm:$0xff]  ;;  %v2014_v30 = vld [vmem:[%s3274_s5 + $0x18] sm:$0xff]   ;;  %v1110_v14 = vld [vmem:[%s3272_s3 + $0x50] sm:$0xff] }
 0x292   :  { %2035 = vrcp.f32 %v1105_v58  ;;  %1899 = vmatprep.subr.bf16.mxu0 %v2012_v20  ;;  %v1111_v41 = vld [vmem:[%s3272_s3 + $0x58] sm:$0xff]  ;;  %v2015_v16 = vld [vmem:[%s3274_s5 + $0x20] sm:$0xff]   ;;  %v1113_v53 = vld [vmem:[%s3272_s3 + $0x68] sm:$0xff] }
 0x293   :  { %2037 = vrcp.f32 %v1104_v59  ;;  %v1112_v45 = vld [vmem:[%s3272_s3 + $0x60] sm:$0xff]  ;;  %v2016_v38 = vld [vmem:[%s3274_s5 + $0x28] sm:$0xff]   ;;  %v1115_v19 = vld [vmem:[%s3272_s3 + $0x78] sm:$0xff] }
 0x294   :  { %2039 = vrcp.f32 %v1107_v27  ;;  %v1114_v0 = vld [vmem:[%s3272_s3 + $0x70] sm:$0xff]  ;;  %v2018_v31 = vld [vmem:[%s3274_s5 + $0x38] sm:$0xff]   ;;  %v2019_v18 = vld [vmem:[%s3276_s7] sm:$0xff]  }
 0x295   :  { %2041 = vrcp.f32 %v1106_v13  ;;  %1900 = vmatpush3.bf16.msra.mxu0 %v2012_v20  ;;  %v2017_v4 = vld [vmem:[%s3274_s5 + $0x30] sm:$0xff]   ;;  %v2020_v5 = vld [vmem:[%s3276_s7 + $0x8] sm:$0xff]   ;;  %1929 = vmatprep.subr.bf16.mxu1 %v2019_v18  ;;  %v2022_v33 = vld [vmem:[%s3276_s7 + $0x18] sm:$0xff]  }
 0x296   :  { %1901 = vmatprep.subr.bf16.mxu0 %v2013_v10  ;;  %2043 = vrcp.f32 %v1109_v47  ;;  %1930 = vmatpush3.bf16.msra.mxu1 %v2019_v18  ;;  %v2021_v51 = vld [vmem:[%s3276_s7 + $0x10] sm:$0xff]   ;;  %v2023_v11 = vld [vmem:[%s3276_s7 + $0x20] sm:$0xff]   ;;  %v2024_v35 = vld [vmem:[%s3276_s7 + $0x28] sm:$0xff]  }
 0x297   :  { %2045 = vrcp.f32 %v1108_v8  ;;  %1931 = vmatprep.subr.bf16.mxu1 %v2020_v5  ;;  %v1134_v34 = vld [vmem:[#allocation2 + $0x10] sm:$0xff]  ;;  %v1135_v62 = vld [vmem:[#allocation2 + $0x18] sm:$0xff]  ;;  %v1132_v9 = vld [vmem:[#allocation2] sm:$0xff] }
 0x298   :  { %v2028_v26 = vpop.eup %2027  ;;  %2047 = vrcp.f32 %v1111_v41  ;;  %v1133_v60 = vld [vmem:[#allocation2 + $0x8] sm:$0xff]  ;;  %v1136_v29 = vld [vmem:[#allocation2 + $0x20] sm:$0xff]  ;;  %v1139_v57 = vld [vmem:[#allocation2 + $0x38] sm:$0xff] }
 0x299   :  { %v2030_v6 = vpop.eup %2029  ;;  %1160 = vperm.xlu1 %2010, %v2028_v26   ;;  %1902 = vmatpush3.bf16.msra.mxu0 %v2013_v10  ;;  %2049 = vrcp.f32 %v1110_v14  ;;  %v1137_v7 = vld [vmem:[#allocation2 + $0x28] sm:$0xff]  ;;  %v1138_v44 = vld [vmem:[#allocation2 + $0x30] sm:$0xff]  ;;  %v1140_v10 = vld [vmem:[#allocation2 + $0x40] sm:$0xff] }
 0x29a   :  { %v2032_v61 = vpop.eup %2031  ;;  %1150 = vperm.xlu0 %2009, %v2030_v6   ;;  %1903 = vmatprep.subr.bf16.mxu0 %v2014_v30  ;;  %2051 = vrcp.f32 %v1113_v53  ;;  %v1141_v13 = vld [vmem:[#allocation2 + $0x48] sm:$0xff]  ;;  %v1811_v18 = vld [vmem:[%s3275_s6] ss:$0 sm:$0xff] }
 0x29b   :  { %v2034_v21 = vpop.eup %2033  ;;  %2053 = vrcp.f32 %v1112_v45  ;;  %1932 = vmatpush3.bf16.msra.mxu1 %v2020_v5  ;;  %v1145_v53 = vld [vmem:[#allocation2 + $0x68] sm:$0xff] }
 0x29c   :  { %v2036_v39 = vpop.eup %2035  ;;  %2055 = vrcp.f32 %v1115_v19  ;;  %1933 = vmatprep.subr.bf16.mxu1 %v2021_v51 }
 0x29d   :  { %1165 = vperm.xlu1 %2010, %v2032_v61   ;;  %v2038_v12 = vpop.eup %2037  ;;  %1904 = vmatpush3.bf16.msra.mxu0 %v2014_v30  ;;  %2057 = vrcp.f32 %v1114_v0  ;;  %v1143_v30 = vld [vmem:[#allocation2 + $0x58] sm:$0xff] }
 0x29e   :  { %1155 = vperm.xlu0 %2009, %v2034_v21   ;;  %v2040_v3 = vpop.eup %2039  ;;  %1905 = vmatprep.subr.bf16.mxu0 %v2015_v16  ;;  %v1142_v21 = vld [vmem:[#allocation2 + $0x50] sm:$0xff]  ;;  %v1147_v0 = vld [vmem:[#allocation2 + $0x78] sm:$0xff] }
 0x29f   :  { %v2042_v28 = vpop.eup %2041  ;;  %1934 = vmatpush3.bf16.msra.mxu1 %v2021_v51 }
 0x2a0   :  { %v2044_v17 = vpop.eup %2043  ;;  %1935 = vmatprep.subr.bf16.mxu1 %v2022_v33 }
 0x2a1   :  { %1175 = vperm.xlu1 %2010, %v2036_v39   ;;  %1906 = vmatpush3.bf16.msra.mxu0 %v2015_v16  ;;  %v2046_v63 = vpop.eup %2045 }
 0x2a2   :  { %1170 = vperm.xlu0 %2009, %v2038_v12   ;;  %1907 = vmatprep.subr.bf16.mxu0 %v2016_v38  ;;  %v2048_v55 = vpop.eup %2047 }
 0x2a3   :  { %v2050_v22 = vpop.eup %2049  ;;  %1936 = vmatpush3.bf16.msra.mxu1 %v2022_v33 }
 0x2a4   :  { %v2052_v49 = vpop.eup %2051  ;;  %1937 = vmatprep.subr.bf16.mxu1 %v2023_v11 }
 0x2a5   :  { %1185 = vperm.xlu1 %2010, %v2040_v3   ;;  %1908 = vmatpush3.bf16.msra.mxu0 %v2016_v38  ;;  %v2054_v32 = vpop.eup %2053  ;;  %v1144_v3 = vld [vmem:[#allocation2 + $0x60] sm:$0xff] }
 0x2a6   :  { %1180 = vperm.xlu0 %2009, %v2042_v28   ;;  %1909 = vmatprep.subr.bf16.mxu0 %v2017_v4  ;;  %v2056_v36 = vpop.eup %2055 }
 0x2a7   :  { %v2058_v52 = vpop.eup %2057  ;;  %1938 = vmatpush3.bf16.msra.mxu1 %v2023_v11 }
 0x2a8   :  { %1939 = vmatprep.subr.bf16.mxu1 %v2024_v35 }
 0x2a9   :  { %1195 = vperm.xlu1 %2010, %v2044_v17   ;;  %1910 = vmatpush3.bf16.msra.mxu0 %v2017_v4 }
 0x2aa   :  { %1190 = vperm.xlu0 %2009, %v2046_v63   ;;  %1911 = vmatprep.subr.bf16.mxu0 %v2018_v31  ;;  %v1146_v63 = vld [vmem:[#allocation2 + $0x70] sm:$0xff] }
 0x2ab   :  { %1940 = vmatpush3.bf16.msra.mxu1 %v2024_v35 }
 0x2ad   :  { %1205 = vperm.xlu1 %2010, %v2048_v55   ;;  %1912 = vmatpush3.bf16.msra.mxu0 %v2018_v31 }
 0x2ae   :  { %1200 = vperm.xlu0 %2009, %v2050_v22  }
 0x2b1   :  { %1215 = vperm.xlu1 %2010, %v2052_v49  }
 0x2b2   :  { %1210 = vperm.xlu0 %2009, %v2054_v32  }
 0x2b5   :  { %1225 = vperm.xlu1 %2010, %v2056_v36   ;;  %v2025_v36 = vld [vmem:[%s3276_s7 + $0x30] sm:$0xff]  }
 0x2b6   :  { %1220 = vperm.xlu0 %2009, %v2058_v52   ;;  %1941 = vmatprep.subr.bf16.mxu1 %v2025_v36  ;;  %v2026_v52 = vld [vmem:[%s3276_s7 + $0x38] sm:$0xff]  }
 0x2b7   :  { %1942 = vmatpush3.bf16.msra.mxu1 %v2025_v36 }
 0x2b8   :  { %1943 = vmatprep.subr.bf16.mxu1 %v2026_v52 }
 0x2bb   :  { %1944 = vmatpush3.bf16.msra.mxu1 %v2026_v52 }
 0x318   :  { %v1161_v50 = vpop.permute.xlu1 %1160 }
 0x319   :  { %v1151_v2 = vpop.permute.xlu0 %1150  ;;  %v1230_v40 = vmul.f32 %v1161_v50, %v1134_v34 }
 0x31a   :  { %v1228_v46 = vmul.f32 %v1151_v2, %v1132_v9 }
 0x31c   :  { %v1166_v48 = vpop.permute.xlu1 %1165 }
 0x31d   :  { %v1231_v42 = vmul.f32 %v1166_v48, %v1135_v62  ;;  %v1156_v24 = vpop.permute.xlu0 %1155 }
 0x31e   :  { %v1229_v15 = vmul.f32 %v1156_v24, %v1133_v60 }
 0x31f   :  { %v1245_v43 = vpack.c.bf16 %v1231_v42, %v1230_v40 }
 0x320   :  { %v1176_v37 = vpop.permute.xlu1 %1175  ;;  %v1244_v56 = vpack.c.bf16 %v1229_v15, %v1228_v46 }
 0x321   :  { %v1233_v54 = vmul.f32 %v1176_v37, %v1137_v7  ;;  %v1171_v23 = vpop.permute.xlu0 %1170 }
 0x322   :  { %v1232_v1 = vmul.f32 %v1171_v23, %v1136_v29  ;;  %1913 = vmatprep.mubr.bf16.mxu0 %v1244_v56 }
 0x323   :  { %1914 = vmatmul.mubr.bf16.vlgmr.msra.gmra.mrb[0].mxu0 %v1245_v43 }
 0x324   :  { %v1246_v58 = vpack.c.bf16 %v1233_v54, %v1232_v1  ;;  %v1186_v59 = vpop.permute.xlu1 %1185 }
 0x325   :  { %v1235_v25 = vmul.f32 %v1186_v59, %v1139_v57  ;;  %v1181_v20 = vpop.permute.xlu0 %1180 }
 0x326   :  { %v1234_v27 = vmul.f32 %v1181_v20, %v1138_v44  ;;  %1917 = vmatprep.mubr.bf16.mxu0 %v1246_v58 }
 0x328   :  { %v1247_v26 = vpack.c.bf16 %v1235_v25, %v1234_v27  ;;  %v1196_v6 = vpop.permute.xlu1 %1195 }
 0x329   :  { %v1237_v47 = vmul.f32 %v1196_v6, %v1141_v13  ;;  %v1191_v8 = vpop.permute.xlu0 %1190 }
 0x32a   :  { %v1236_v61 = vmul.f32 %v1191_v8, %v1140_v10 }
 0x32b   :  { %1918 = vmatmul.mubr.bf16.gmra.mrb[4].mxu0 %v1247_v26 }
 0x32c   :  { %v1248_v41 = vpack.c.bf16 %v1237_v47, %v1236_v61  ;;  %v1206_v14 = vpop.permute.xlu1 %1205 }
 0x32d   :  { %v1239_v39 = vmul.f32 %v1206_v14, %v1143_v30  ;;  %v1201_v12 = vpop.permute.xlu0 %1200 }
 0x32e   :  { %v1238_v16 = vmul.f32 %v1201_v12, %v1142_v21  ;;  %1921 = vmatprep.mubr.bf16.mxu0 %v1248_v41 }
 0x330   :  { %v1249_v45 = vpack.c.bf16 %v1239_v39, %v1238_v16  ;;  %v1216_v28 = vpop.permute.xlu1 %1215 }
 0x331   :  { %v1241_v38 = vmul.f32 %v1216_v28, %v1145_v53  ;;  %v1211_v19 = vpop.permute.xlu0 %1210 }
 0x332   :  { %v1240_v17 = vmul.f32 %v1211_v19, %v1144_v3 }
 0x333   :  { %1922 = vmatmul.mubr.bf16.gmra.mrb[8].mxu0 %v1249_v45 }
 0x334   :  { %v1250_v4 = vpack.c.bf16 %v1241_v38, %v1240_v17  ;;  %v1226_v55 = vpop.permute.xlu1 %1225 }
 0x335   :  { %v1243_v22 = vmul.f32 %v1226_v55, %v1147_v0  ;;  %v1221_v31 = vpop.permute.xlu0 %1220  ;;  %v1820_v55 = vld [vmem:[%s3277_s8] ss:$0 sm:$0xff]  ;;  %s2157_s8 = smov [#allocation6]  }
 0x336   :  { %v1242_v49 = vmul.f32 %v1221_v31, %v1146_v63  ;;  %1925 = vmatprep.mubr.bf16.mxu0 %v1250_v4  ;;  %s1777_s18 = sshll.u32 %s2157_s8, 4  ;;  %s1778_s18 = int_to_ptr.vmem [resolvable:$true] %s1777_s18 }
 0x337   :  { %s2123_s19 = scalar_lea.vmem %s1778_s18, 2048  ;;  %p2128_p3 = scmp.lt.s32.totalorder %s1778_s18, %s1778_s18 }
 0x338   :  { %v1251_v32 = vpack.c.bf16 %v1243_v22, %v1242_v49  ;;  %p2124_p2 = scmp.ne.s32.totalorder %s1778_s18, %s2123_s19  ;;  %p2129_p4 = scmp.lt.s32.totalorder %s2123_s19, %s2123_s19 }
 0x33a   :  { %p2130_p5 = por %p2129_p4, %p2128_p3 }
 0x33b   :  { %1926 = vmatmul.mubr.bf16.gmra.mrb[12].mxu0 %v1251_v32 }
 0x33c   :  { %p2131_p6 = pnand %p2130_p5, %p2124_p2 }
 0x3f6   :  { %v1915_v5 = vpop.f32.mrb[0].mxu0 }
 0x3f7   :  { %v1366_v51 = vadd.f32 %v1915_v5, %v1811_v18  ;;  %v1357_v33 = vpop.f32.mrb[1].mxu0 }
 0x3f8   :  { %v1358_v11 = vadd.f32 %v1811_v18, %v1357_v33  ;;  %v1916_v35 = vpop.f32.mrb[2].mxu0 }
 0x3f9   :  { %v1369_v50 = vadd.f32 %v1916_v35, %v1811_v18  ;;  %v1360_v2 = vpop.f32.mrb[3].mxu0  ;;  %v1422_v62 = vmax.f32 %v1366_v51, 0.0 }
 0x3fa   :  { %v1361_v34 = vadd.f32 %v1811_v18, %v1360_v2  ;;  %v1420_v60 = vmax.f32 %v1358_v11, 0.0 }
 0x3fb   :  { %v1423_v9 = vmax.f32 %v1369_v50, 0.0 }
 0x3fc   :  { %v1421_v48 = vmax.f32 %v1361_v34, 0.0 }
 0x3fd   :  { %v1437_v40 = vpack.c.bf16 %v1423_v9, %v1422_v62 }
 0x3fe   :  { %v1919_v42 = vpop.f32.mrb[4].mxu0  ;;  %v1436_v24 = vpack.c.bf16 %v1421_v48, %v1420_v60 }
 0x3ff   :  { %v1382_v46 = vadd.f32 %v1919_v42, %v1811_v18  ;;  %v1373_v15 = vpop.f32.mrb[5].mxu0 }
 0x400   :  { %v1374_v7 = vadd.f32 %v1811_v18, %v1373_v15  ;;  %v1920_v43 = vpop.f32.mrb[6].mxu0  ;;  %1945 = vmatprep.mubr.bf16.mxu1 %v1436_v24 }
 0x401   :  { %v1385_v29 = vadd.f32 %v1920_v43, %v1811_v18  ;;  %v1376_v37 = vpop.f32.mrb[7].mxu0  ;;  %1946 = vmatmul.mubr.bf16.vlgmr.msra.gmra.mrb[0].mxu1 %v1437_v40  ;;  %v1426_v54 = vmax.f32 %v1382_v46, 0.0 }
 0x402   :  { %v1377_v56 = vadd.f32 %v1811_v18, %v1376_v37  ;;  %v1424_v1 = vmax.f32 %v1374_v7, 0.0 }
 0x403   :  { %v1427_v23 = vmax.f32 %v1385_v29, 0.0 }
 0x404   :  { %v1425_v57 = vmax.f32 %v1377_v56, 0.0 }
 0x405   :  { %v1439_v44 = vpack.c.bf16 %v1427_v23, %v1426_v54 }
 0x406   :  { %v1438_v58 = vpack.c.bf16 %v1425_v57, %v1424_v1  ;;  %v1923_v59 = vpop.f32.mrb[8].mxu0 }
 0x407   :  { %v1398_v25 = vadd.f32 %v1923_v59, %v1811_v18  ;;  %v1389_v20 = vpop.f32.mrb[9].mxu0 }
 0x408   :  { %v1390_v27 = vadd.f32 %v1811_v18, %v1389_v20  ;;  %v1924_v13 = vpop.f32.mrb[10].mxu0  ;;  %1949 = vmatprep.mubr.bf16.mxu1 %v1438_v58 }
 0x409   :  { %v1401_v10 = vadd.f32 %v1924_v13, %v1811_v18  ;;  %v1392_v26 = vpop.f32.mrb[11].mxu0  ;;  %1950 = vmatmul.mubr.bf16.gmra.mrb[4].mxu1 %v1439_v44  ;;  %v1430_v47 = vmax.f32 %v1398_v25, 0.0 }
 0x40a   :  { %v1393_v6 = vadd.f32 %v1811_v18, %v1392_v26  ;;  %v1428_v61 = vmax.f32 %v1390_v27, 0.0 }
 0x40b   :  { %v1431_v8 = vmax.f32 %v1401_v10, 0.0 }
 0x40c   :  { %v1429_v30 = vmax.f32 %v1393_v6, 0.0 }
 0x40d   :  { %v1441_v21 = vpack.c.bf16 %v1431_v8, %v1430_v47 }
 0x40e   :  { %v1440_v41 = vpack.c.bf16 %v1429_v30, %v1428_v61  ;;  %v1927_v14 = vpop.f32.mrb[12].mxu0 }
 0x40f   :  { %v1414_v39 = vadd.f32 %v1927_v14, %v1811_v18  ;;  %v1405_v12 = vpop.f32.mrb[13].mxu0 }
 0x410   :  { %v1406_v16 = vadd.f32 %v1811_v18, %v1405_v12  ;;  %v1928_v53 = vpop.f32.mrb[14].mxu0  ;;  %1953 = vmatprep.mubr.bf16.mxu1 %v1440_v41 }
 0x411   :  { %v1417_v3 = vadd.f32 %v1928_v53, %v1811_v18  ;;  %v1408_v45 = vpop.f32.mrb[15].mxu0  ;;  %1954 = vmatmul.mubr.bf16.gmra.mrb[8].mxu1 %v1441_v21  ;;  %v1434_v38 = vmax.f32 %v1414_v39, 0.0 }
 0x412   :  { %v1409_v28 = vadd.f32 %v1811_v18, %v1408_v45  ;;  %v1432_v17 = vmax.f32 %v1406_v16, 0.0 }
 0x413   :  { %v1435_v19 = vmax.f32 %v1417_v3, 0.0 }
 0x414   :  { %v1433_v0 = vmax.f32 %v1409_v28, 0.0 }
 0x415   :  { %v1443_v63 = vpack.c.bf16 %v1435_v19, %v1434_v38 }
 0x416   :  { %v1442_v4 = vpack.c.bf16 %v1433_v0, %v1432_v17 }
 0x418   :  { %1957 = vmatprep.mubr.bf16.mxu1 %v1442_v4 }
 0x419   :  { %1958 = vmatmul.mubr.bf16.gmra.mrb[12].mxu1 %v1443_v63 }
 0x4d4   :  { %v1947_v22 = vpop.f32.mrb[0].mxu1 }
 0x4d5   :  { %v1558_v31 = vadd.f32 %v1947_v22, %v1820_v55  ;;  %v1549_v49 = vpop.f32.mrb[1].mxu1 }
 0x4d6   :  { %v1948_v32 = vpop.f32.mrb[2].mxu1  ;;  %v1550_v18 = vadd.f32 %v1820_v55, %v1549_v49 }
 0x4d7   :  { %1616 = vmax.xlane.f32.xlu0 %v1558_v31  ;;  %v1552_v36 = vpop.f32.mrb[3].mxu1  ;;  %v1561_v51 = vadd.f32 %v1948_v32, %v1820_v55 }
 0x4d8   :  { %v1553_v52 = vadd.f32 %v1820_v55, %v1552_v36 }
 0x4da   :  { %1614 = vmax.xlane.f32.xlu1 %v1553_v52 }
 0x4db   :  { %1612 = vmax.xlane.f32.xlu0 %v1550_v18 }
 0x4dc   :  { %v1951_v5 = vpop.f32.mrb[4].mxu1 }
 0x4dd   :  { %v1574_v33 = vadd.f32 %v1951_v5, %v1820_v55  ;;  %v1565_v11 = vpop.f32.mrb[5].mxu1 }
 0x4de   :  { %v1952_v35 = vpop.f32.mrb[6].mxu1  ;;  %v1566_v2 = vadd.f32 %v1820_v55, %v1565_v11 }
 0x4df   :  { %1618 = vmax.xlane.f32.xlu0 %v1561_v51  ;;  %1624 = vmax.xlane.f32.xlu1 %v1574_v33  ;;  %v1568_v50 = vpop.f32.mrb[7].mxu1  ;;  %v1577_v34 = vadd.f32 %v1952_v35, %v1820_v55 }
 0x4e0   :  { %v3165_v9 = vadd.f32 %v1820_v55, %v1568_v50 }
 0x4e3   :  { %1626 = vmax.xlane.f32.xlu0 %v1577_v34  ;;  %1620 = vmax.xlane.f32.xlu1 %v1566_v2 }
 0x4e4   :  { %v1955_v62 = vpop.f32.mrb[8].mxu1 }
 0x4e5   :  { %v1590_v60 = vadd.f32 %v1955_v62, %v1820_v55  ;;  %v1581_v48 = vpop.f32.mrb[9].mxu1 }
 0x4e6   :  { %v1956_v40 = vpop.f32.mrb[10].mxu1  ;;  %v1582_v24 = vadd.f32 %v1820_v55, %v1581_v48 }
 0x4e7   :  { %1622 = vmax.xlane.f32.xlu0 %v3165_v9  ;;  %1632 = vmax.xlane.f32.xlu1 %v1590_v60  ;;  %v1584_v42 = vpop.f32.mrb[11].mxu1  ;;  %v3168_v46 = vadd.f32 %v1956_v40, %v1820_v55 }
 0x4e8   :  { %v3171_v7 = vadd.f32 %v1820_v55, %v1584_v42 }
 0x4eb   :  { %1634 = vmax.xlane.f32.xlu0 %v3168_v46  ;;  %1628 = vmax.xlane.f32.xlu1 %v1582_v24 }
 0x4ec   :  { %v1959_v15 = vpop.f32.mrb[12].mxu1 }
 0x4ed   :  { %v1597_v43 = vpop.f32.mrb[13].mxu1  ;;  %v3179_v23 = vadd.f32 %v1959_v15, %v1820_v55 }
 0x4ee   :  { %v3173_v29 = vadd.f32 %v1820_v55, %v1597_v43  ;;  %v1960_v37 = vpop.f32.mrb[14].mxu1 }
 0x4ef   :  { %1630 = vmax.xlane.f32.xlu0 %v3171_v7  ;;  %v1600_v56 = vpop.f32.mrb[15].mxu1  ;;  %v3183_v1 = vadd.f32 %v1960_v37, %v1820_v55 }
 0x4f0   :  { %v3176_v54 = vadd.f32 %v1820_v55, %v1600_v56  ;;  %1636 = vmax.xlane.f32.xlu1 %v3173_v29 }
 0x4f3   :  { %1638 = vmax.xlane.f32.xlu0 %v3176_v54 }
 0x4f4   :  { %1640 = vmax.xlane.f32.xlu1 %v3179_v23 }
 0x4f7   :  { %1642 = vmax.xlane.f32.xlu0 %v3183_v1 }
 0x564   :  { %v1617_v57 = vpop.xlane.xlu0 %1616 }
 0x565   :  { %v1646_v44 = vsub.f32 %v1558_v31, %v1617_v57 }
 0x567   :  { %v1664_v58 = vmul.f32 1.442695, %v1646_v44  ;;  %v1615_v59 = vpop.xlane.xlu1 %1614 }
 0x568   :  { %v1613_v25 = vpop.xlane.xlu0 %1612  ;;  %v1645_v47 = vsub.f32 %v1553_v52, %v1615_v59 }
 0x569   :  { %2059 = vpow2.f32 %v1664_v58  ;;  %v1644_v20 = vsub.f32 %v1550_v18, %v1613_v25 }
 0x56a   :  { %v1662_v14 = vmul.f32 1.442695, %v1645_v47 }
 0x56b   :  { %v1660_v27 = vmul.f32 1.442695, %v1644_v20 }
 0x56c   :  { %v1625_v13 = vpop.xlane.xlu1 %1624  ;;  %v1619_v10 = vpop.xlane.xlu0 %1618 }
 0x56d   :  { %2061 = vpow2.f32 %v1660_v27  ;;  %v1650_v26 = vsub.f32 %v1574_v33, %v1625_v13  ;;  %v1647_v6 = vsub.f32 %v1561_v51, %v1619_v10 }
 0x56f   :  { %v1672_v8 = vmul.f32 1.442695, %v1650_v26  ;;  %v1666_v61 = vmul.f32 1.442695, %v1647_v6 }
 0x570   :  { %v1621_v30 = vpop.xlane.xlu1 %1620  ;;  %v1627_v21 = vpop.xlane.xlu0 %1626 }
 0x571   :  { %2063 = vpow2.f32 %v1672_v8  ;;  %v1648_v41 = vsub.f32 %v1566_v2, %v1621_v30  ;;  %v1651_v39 = vsub.f32 %v1577_v34, %v1627_v21 }
 0x572   :  { %2065 = vpow2.f32 %v1666_v61 }
 0x573   :  { %v3186_v12 = vpop.eup %2059  ;;  %v1668_v16 = vmul.f32 1.442695, %v1648_v41  ;;  %v1674_v28 = vmul.f32 1.442695, %v1651_v39 }
 0x574   :  { %v1633_v53 = vpop.xlane.xlu1 %1632  ;;  %1696 = vadd.xlane.f32.xlu1 %v3186_v12  ;;  %v1623_v3 = vpop.xlane.xlu0 %1622 }
 0x575   :  { %2067 = vpow2.f32 %v1668_v16  ;;  %v1654_v45 = vsub.f32 %v1590_v60, %v1633_v53  ;;  %v1649_v38 = vsub.f32 %v3165_v9, %v1623_v3 }
 0x576   :  { %2069 = vpow2.f32 %v1662_v14 }
 0x577   :  { %v3190_v19 = vpop.eup %2061  ;;  %v1680_v17 = vmul.f32 1.442695, %v1654_v45  ;;  %v1670_v22 = vmul.f32 1.442695, %v1649_v38 }
 0x578   :  { %v1629_v0 = vpop.xlane.xlu1 %1628  ;;  %1692 = vadd.xlane.f32.xlu1 %v3190_v19  ;;  %v1635_v63 = vpop.xlane.xlu0 %1634 }
 0x579   :  { %2071 = vpow2.f32 %v1680_v17  ;;  %v1652_v4 = vsub.f32 %v1582_v24, %v1629_v0  ;;  %v1655_v55 = vsub.f32 %v3168_v46, %v1635_v63 }
 0x57a   :  { %2073 = vpow2.f32 %v1674_v28 }
 0x57b   :  { %v3194_v31 = vpop.eup %2063  ;;  %v1676_v49 = vmul.f32 1.442695, %v1652_v4  ;;  %v1682_v52 = vmul.f32 1.442695, %v1655_v55 }
 0x57c   :  { %v3196_v32 = vpop.eup %2065  ;;  %1704 = vadd.xlane.f32.xlu1 %v3194_v31  ;;  %v1631_v36 = vpop.xlane.xlu0 %1630 }
 0x57d   :  { %2075 = vpow2.f32 %v1676_v49  ;;  %1698 = vadd.xlane.f32.xlu0 %v3196_v32  ;;  %v1653_v18 = vsub.f32 %v3171_v7, %v1631_v36  ;;  %v1637_v5 = vpop.xlane.xlu1 %1636 }
 0x57e   :  { %2077 = vpow2.f32 %v1670_v22  ;;  %v1656_v51 = vsub.f32 %v3173_v29, %v1637_v5 }
 0x57f   :  { %v3202_v33 = vpop.eup %2067  ;;  %2079 = vpow2.f32 %v1682_v52  ;;  %v1678_v2 = vmul.f32 1.442695, %v1653_v18 }
 0x580   :  { %v3204_v11 = vpop.eup %2069  ;;  %v1684_v35 = vmul.f32 1.442695, %v1656_v51  ;;  %1700 = vadd.xlane.f32.xlu1 %v3202_v33  ;;  %v1639_v50 = vpop.xlane.xlu0 %1638 }
 0x581   :  { %1694 = vadd.xlane.f32.xlu0 %v3204_v11  ;;  %v1641_v34 = vpop.xlane.xlu1 %1640  ;;  %v1657_v62 = vsub.f32 %v3176_v54, %v1639_v50 }
 0x582   :  { %2081 = vpow2.f32 %v1684_v35  ;;  %v1658_v9 = vsub.f32 %v3179_v23, %v1641_v34 }
 0x583   :  { %v3210_v60 = vpop.eup %2071  ;;  %2083 = vpow2.f32 %v1678_v2  ;;  %v1686_v24 = vmul.f32 1.442695, %v1657_v62 }
 0x584   :  { %v3212_v48 = vpop.eup %2073  ;;  %v1688_v40 = vmul.f32 1.442695, %v1658_v9  ;;  %1712 = vadd.xlane.f32.xlu1 %v3210_v60  ;;  %v1643_v42 = vpop.xlane.xlu0 %1642 }
 0x585   :  { %1706 = vadd.xlane.f32.xlu0 %v3212_v48  ;;  %v1659_v46 = vsub.f32 %v3183_v1, %v1643_v42 }
 0x586   :  { %2085 = vpow2.f32 %v1688_v40 }
 0x587   :  { %v3217_v15 = vpop.eup %2075  ;;  %2087 = vpow2.f32 %v1686_v24  ;;  %v1690_v43 = vmul.f32 1.442695, %v1659_v46 }
 0x588   :  { %v3219_v7 = vpop.eup %2077  ;;  %1708 = vadd.xlane.f32.xlu1 %v3217_v15 }
 0x589   :  { %1702 = vadd.xlane.f32.xlu0 %v3219_v7  ;;  %v3223_v29 = vpop.eup %2079  ;;  %2089 = vpow2.f32 %v1690_v43 }
 0x58c   :  { %v3225_v37 = vpop.eup %2081 }
 0x58d   :  { %1714 = vadd.xlane.f32.xlu0 %v3223_v29  ;;  %1716 = vadd.xlane.f32.xlu1 %v3225_v37  ;;  %v3229_v56 = vpop.eup %2083 }
 0x590   :  { %v3231_v54 = vpop.eup %2085 }
 0x591   :  { %1710 = vadd.xlane.f32.xlu0 %v3229_v56  ;;  %1720 = vadd.xlane.f32.xlu1 %v3231_v54  ;;  %v3235_v23 = vpop.eup %2087 }
 0x593   :  { %v3238_v1 = vpop.eup %2089 }
 0x595   :  { %1718 = vadd.xlane.f32.xlu0 %v3235_v23 }
 0x599   :  { %1722 = vadd.xlane.f32.xlu0 %v3238_v1 }
 0x601   :  { %v1697_v57 = vpop.xlane.xlu1 %1696 }
 0x602   :  { %2091 = vrcp.f32 %v1697_v57 }
 0x605   :  { %v1693_v44 = vpop.xlane.xlu1 %1692 }
 0x606   :  { %2093 = vrcp.f32 %v1693_v44 }
 0x609   :  { %v1705_v58 = vpop.xlane.xlu1 %1704 }
 0x60a   :  { %2095 = vrcp.f32 %v1705_v58  ;;  %v1699_v59 = vpop.xlane.xlu0 %1698 }
 0x60b   :  { %2097 = vrcp.f32 %v1699_v59 }
 0x60c   :  { %v2092_v25 = vpop.eup %2091 }
 0x60d   :  { %v1742_v20 = vmul.f32 %v2092_v25, %v3186_v12  ;;  %v1701_v27 = vpop.xlane.xlu1 %1700 }
 0x60e   :  { %2099 = vrcp.f32 %v1701_v27  ;;  %v1695_v13 = vpop.xlane.xlu0 %1694 }
 0x60f   :  { %1758 = vst [vmem:[#allocation6 + $0x10] sm:$0xff] %v1742_v20  ;;  %2101 = vrcp.f32 %v1695_v13 }
 0x610   :  { %v2094_v10 = vpop.eup %2093 }
 0x611   :  { %v1740_v26 = vmul.f32 %v2094_v10, %v3190_v19  ;;  %v1713_v6 = vpop.xlane.xlu1 %1712 }
 0x612   :  { %2103 = vrcp.f32 %v1713_v6  ;;  %v1707_v47 = vpop.xlane.xlu0 %1706 }
 0x613   :  { %1756 = vst [vmem:[#allocation6] sm:$0xff] %v1740_v26  ;;  %2105 = vrcp.f32 %v1707_v47 }
 0x614   :  { %v2096_v8 = vpop.eup %2095 }
 0x615   :  { %v2098_v61 = vpop.eup %2097  ;;  %v1746_v30 = vmul.f32 %v2096_v8, %v3194_v31  ;;  %v1709_v21 = vpop.xlane.xlu1 %1708 }
 0x616   :  { %v1743_v41 = vmul.f32 %v2098_v61, %v3196_v32  ;;  %2107 = vrcp.f32 %v1709_v21  ;;  %v1703_v14 = vpop.xlane.xlu0 %1702 }
 0x617   :  { %1762 = vst [vmem:[#allocation6 + $0x30] sm:$0xff] %v1746_v30  ;;  %2109 = vrcp.f32 %v1703_v14 }
 0x618   :  { %v2100_v39 = vpop.eup %2099  ;;  %1759 = vst [vmem:[#allocation6 + $0x18] sm:$0xff] %v1743_v41 }
 0x619   :  { %v2102_v12 = vpop.eup %2101  ;;  %v1744_v16 = vmul.f32 %v2100_v39, %v3202_v33 }
 0x61a   :  { %v1741_v53 = vmul.f32 %v2102_v12, %v3204_v11  ;;  %v1715_v3 = vpop.xlane.xlu0 %1714  ;;  %v1717_v45 = vpop.xlane.xlu1 %1716 }
 0x61b   :  { %1760 = vst [vmem:[#allocation6 + $0x20] sm:$0xff] %v1744_v16  ;;  %2111 = vrcp.f32 %v1715_v3 }
 0x61c   :  { %v2104_v28 = vpop.eup %2103  ;;  %1757 = vst [vmem:[#allocation6 + $0x8] sm:$0xff] %v1741_v53  ;;  %2113 = vrcp.f32 %v1717_v45 }
 0x61d   :  { %v2106_v38 = vpop.eup %2105  ;;  %v1750_v19 = vmul.f32 %v2104_v28, %v3210_v60 }
 0x61e   :  { %v1747_v17 = vmul.f32 %v2106_v38, %v3212_v48  ;;  %v1711_v0 = vpop.xlane.xlu0 %1710  ;;  %v1721_v63 = vpop.xlane.xlu1 %1720 }
 0x61f   :  { %1766 = vst [vmem:[#allocation6 + $0x50] sm:$0xff] %v1750_v19  ;;  %2115 = vrcp.f32 %v1711_v0 }
 0x620   :  { %v2108_v4 = vpop.eup %2107  ;;  %1763 = vst [vmem:[#allocation6 + $0x38] sm:$0xff] %v1747_v17  ;;  %2117 = vrcp.f32 %v1721_v63 }
 0x621   :  { %v2110_v55 = vpop.eup %2109  ;;  %v1748_v22 = vmul.f32 %v2108_v4, %v3217_v15 }
 0x622   :  { %v1745_v31 = vmul.f32 %v2110_v55, %v3219_v7  ;;  %v1719_v49 = vpop.xlane.xlu0 %1718 }
 0x623   :  { %1764 = vst [vmem:[#allocation6 + $0x40] sm:$0xff] %v1748_v22  ;;  %2119 = vrcp.f32 %v1719_v49 }
 0x624   :  { %1761 = vst [vmem:[#allocation6 + $0x28] sm:$0xff] %v1745_v31 }
 0x625   :  { %v2112_v32 = vpop.eup %2111 }
 0x626   :  { %v2114_v36 = vpop.eup %2113  ;;  %v1751_v52 = vmul.f32 %v2112_v32, %v3223_v29  ;;  %v1723_v18 = vpop.xlane.xlu0 %1722 }
 0x627   :  { %v1752_v5 = vmul.f32 %v2114_v36, %v3225_v37  ;;  %2121 = vrcp.f32 %v1723_v18 }
 0x628   :  { %1767 = vst [vmem:[#allocation6 + $0x58] sm:$0xff] %v1751_v52 }
 0x629   :  { %v2116_v51 = vpop.eup %2115  ;;  %1768 = vst [vmem:[#allocation6 + $0x60] sm:$0xff] %v1752_v5 }
 0x62a   :  { %v2118_v33 = vpop.eup %2117  ;;  %v1749_v11 = vmul.f32 %v2116_v51, %v3229_v56 }
 0x62b   :  { %v1754_v35 = vmul.f32 %v2118_v33, %v3231_v54 }
 0x62c   :  { %1765 = vst [vmem:[#allocation6 + $0x48] sm:$0xff] %v1749_v11 }
 0x62d   :  { %v2120_v50 = vpop.eup %2119  ;;  %1770 = vst [vmem:[#allocation6 + $0x70] sm:$0xff] %v1754_v35 }
 0x62e   :  { %v1753_v2 = vmul.f32 %v2120_v50, %v3235_v23 }
 0x630   :  { %1769 = vst [vmem:[#allocation6 + $0x68] sm:$0xff] %v1753_v2 }
 0x631   :  { %v2122_v34 = vpop.eup %2121 }
 0x632   :  { %v1755_v62 = vmul.f32 %v2122_v34, %v3238_v1 }
 0x634   :  { %1771 = vst [vmem:[#allocation6 + $0x78] sm:$0xff] %v1755_v62 }
 0x635   :  { %2134 = shalt.err (!%p2131_p6)
}
 0x636   :  { %s2135_s1 = scalar_lea.hbm %s3278_s9, 2048 }
 0x637   :  { %p2136_p7 = scmp.ne.s32.totalorder %s3278_s9, %s2135_s1  ;;  %p2139_p8 = scmp.lt.u32.totalorder %s2135_s1, %s3278_s9 }
 0x639   :  { %p2141_p9 = pnand %p2139_p8, %p2136_p7 }
 0x63b   :  { %2144 = shalt.err (!%p2141_p9)
}
 0x63c   :  { %s2158_s3 = smov 128   ;;  %s2159_s2 = smov 8  }
 0x63d   :  { %1783 = dma.vmem_to_hbm [thread:$0]  %s1778_s18, 2048, %s3278_s9, [#allocation7], %s2158_s3, %s2158_s3, %s2159_s2  }
 0x63e   :  { %2145 = dma.done.wait [#allocation7], 2048  }
 0x63f   :  { %2146 = vsyncadd [#allocation7], 4294965248 }
 0x640   :  { %1787 = vsyncpa [#allocation7], 1 }

</bundles_post_ra>
